<compile_context>
chip_gen: v6e
topology: v6e:2x2x1
jax: 0.10.0
libtpu: 0.0.40
codegen_flags: <defaults>
</compile_context>

<pallas_src>
import jax
import jax.numpy as jnp
from jax.experimental import pallas as pl
from jax.experimental.pallas import tpu as pltpu


def decoder_kernel(emb_ref,      # (1, H)  bf16 : embedding row of the input token
                   hidden_ref,   # (1, H)  f32  : previous GRU hidden state
                   enc_ref,      # (S, H)  f32  : encoder outputs
                   attn_ve_ref,  # (1, H)  f32  : folded attention weight  W_e^T v
                   w_ih_e_ref,   # (H, 3H) bf16 : GRU input weights, embedding half
                   w_ih_c_ref,   # (H, 3H) bf16 : GRU input weights, context half
                   w_hh_ref,     # (H, 3H) bf16 : GRU hidden weights
                   b_ih_ref,     # (1, 3H) f32
                   b_hh_ref,     # (1, 3H) f32
                   out_wh_ref,   # (H, TILE_V) bf16 : output proj weight, hidden half (tile)
                   out_wc_ref,   # (H, TILE_V) bf16 : output proj weight, context half (tile)
                   out_b_ref,    # (1, TILE_V) f32  : output proj bias tile (pad = -1e30)
                   logits_ref,   # out (1, TILE_V) f32 : raw logits for this vocab tile
                   lse_ref,      # out (1, 1) f32 : log-sum-exp over the whole vocab
                   hid_out_ref,  # out (1, H) f32 : new hidden state
                   aw_ref,       # out (1, S) f32 : attention weights (lane-dense)
                   h_bf_ref,     # scratch (1, H) bf16 : new hidden state (MXU operand)
                   c_bf_ref,     # scratch (1, H) bf16 : attention context (MXU operand)
                   m_ref,        # scratch (1, 1) f32 : running max of logits
                   l_ref):       # scratch (1, 1) f32 : running sum of exp(logits - max)
    j = pl.program_id(0)
    H = hidden_ref.shape[1]
    bf16 = jnp.bfloat16

    # ---- attention + GRU: computed once, on the first vocab tile ----
    @pl.when(j == 0)
    def _attention_and_gru():
        hidden = hidden_ref[...]                                   # (1, H) f32
        enc = enc_ref[...]                                         # (S, H) f32

        # scores_i = enc_i . (W_e^T v); the hidden/bias contribution is constant over i
        # and cancels exactly in the softmax. Contract H of both operands so the (1, S)
        # lane-dense row is produced without a transposed copy of enc.
        scores = jax.lax.dot_general(
            attn_ve_ref[...], enc,
            dimension_numbers=(((1,), (1,)), ((), ())),
            preferred_element_type=jnp.float32)                    # (1, S)
        m = jnp.max(scores, axis=1, keepdims=True)
        p = jnp.exp(scores - m)
        aw = p / jnp.sum(p, axis=1, keepdims=True)   # exact division: aw is an output
        aw_ref[...] = aw

        # context = attn_weights @ encoder_outputs : (1, S) x (S, H) MXU matmul.
        context = jnp.dot(aw, enc, preferred_element_type=jnp.float32)   # (1, H) f32

        # GRU cell, input = concat(embedded, context) expressed as two dots over the
        # split weights. bf16 operands go straight to the MXU, f32 accumulation.
        ctx_bf = context.astype(bf16)
        gi = (jnp.dot(emb_ref[...], w_ih_e_ref[...],
                      preferred_element_type=jnp.float32)
              + jnp.dot(ctx_bf, w_ih_c_ref[...],
                        preferred_element_type=jnp.float32)
              + b_ih_ref[...])                                     # (1, 3H)
        gh = (jnp.dot(hidden.astype(bf16), w_hh_ref[...],
                      preferred_element_type=jnp.float32)
              + b_hh_ref[...])                                     # (1, 3H)
        r = jax.nn.sigmoid(gi[:, 0:H] + gh[:, 0:H])
        z = jax.nn.sigmoid(gi[:, H:2 * H] + gh[:, H:2 * H])
        n = jnp.tanh(gi[:, 2 * H:3 * H] + r * gh[:, 2 * H:3 * H])
        h_new = (1.0 - z) * n + z * hidden                         # (1, H) f32
        hid_out_ref[...] = h_new

        # bf16 copies of the projection activations, reused by every vocab tile.
        h_bf_ref[...] = h_new.astype(bf16)
        c_bf_ref[...] = ctx_bf

        # Running log-sum-exp state.
        m_ref[...] = jnp.full(m_ref.shape, -jnp.inf, jnp.float32)
        l_ref[...] = jnp.zeros(l_ref.shape, jnp.float32)

    # ---- output projection for this vocab tile (bf16 weights straight into the MXU) ----
    # TODO(synk): could fuse into one (1,2H)x(2H,TILE_V) dot via a lane-concat of
    # [h | context]; at M=1 the tile DMA dominates either way.
    logits = (jnp.dot(h_bf_ref[...], out_wh_ref[...],
                      preferred_element_type=jnp.float32)
              + jnp.dot(c_bf_ref[...], out_wc_ref[...],
                        preferred_element_type=jnp.float32)
              + out_b_ref[...])                                    # (1, TILE_V) f32
    logits_ref[...] = logits

    # Online log-sum-exp: runs as VPU/EUP/XLU filler under the weight-tile DMA.
    # Padded vocab lanes carry bias -1e30 (and zero weights), so exp(logit - m) -> 0.
    m_old = m_ref[...]
    m_new = jnp.maximum(m_old, jnp.max(logits, axis=1, keepdims=True))
    l_ref[...] = (l_ref[...] * jnp.exp(m_old - m_new)
                  + jnp.sum(jnp.exp(logits - m_new), axis=1, keepdims=True))
    m_ref[...] = m_new

    # ---- finalize: emit the scalar log-sum-exp after the last tile ----
    @pl.when(j == pl.num_programs(0) - 1)
    def _finalize():
        lse_ref[...] = m_ref[...] + jnp.log(l_ref[...])


def decoder_forward(input_idx, hidden, encoder_outputs, params, tile_v=512):
    """input_idx: int32 token id; hidden: (1,1,H); encoder_outputs: (S,H)."""
    f32, bf16 = jnp.float32, jnp.bfloat16
    H = hidden.shape[-1]
    S = encoder_outputs.shape[0]
    V = params["emb"].shape[0]

    # Vocab tiling: lane-aligned tiles (multiple of 128); shrink for small V and pad the
    # vocab up to a whole number of tiles.
    assert tile_v % 128 == 0
    tile_v = min(tile_v, 128 * int(pl.cdiv(V, 128)))
    n_tiles = int(pl.cdiv(V, tile_v))
    v_pad = n_tiles * tile_v
    pad = v_pad - V

    # Embedding lookup in the wrapper: XLA gathers/prefetches the single (1,H) row ahead
    # of the pallas_call; no in-kernel DMA / semaphore / wait at step 0.
    idx = jnp.clip(jnp.asarray(input_idx, jnp.int32), 0, V - 1).reshape((1,))
    emb_row = jnp.take(params["emb"].astype(bf16), idx, axis=0)           # (1, H) bf16

    hidden2d = hidden.reshape(1, H).astype(f32)
    enc = encoder_outputs.astype(f32)                                     # (S, H)

    # Fold v into the attention Linear: score_i = enc_i . (W_e^T v) + const; the constant
    # (hidden + bias contribution) cancels exactly in the softmax.
    w_v = params["attn_w"].T.astype(f32) @ params["v"].astype(f32)        # (2H,)
    attn_ve = w_v[H:].reshape(1, H).astype(f32)                           # encoder half

    # GRU weights split into embedding/context halves (avoids an in-kernel lane concat);
    # all streamed weights are bf16 and consumed by the MXU without up-casting.
    w_ih_t = params["gru_w_ih"].T                                         # (2H, 3H)
    w_ih_e = w_ih_t[:H].astype(bf16)                                      # (H, 3H)
    w_ih_c = w_ih_t[H:].astype(bf16)                                      # (H, 3H)
    w_hh_t = params["gru_w_hh"].T.astype(bf16)                            # (H, 3H)
    b_ih = params["gru_b_ih"].reshape(1, 3 * H).astype(f32)
    b_hh = params["gru_b_hh"].reshape(1, 3 * H).astype(f32)

    # Output projection, hidden/context halves, padded on the vocab axis. Padded columns
    # get zero weights and a -1e30 bias so they never win the running max nor contribute
    # to the sum-of-exp (do NOT change the pad value to 0).
    out_w_t = params["out_w"].T.astype(f32)                               # (2H, V)
    out_wh = jnp.pad(out_w_t[:H], ((0, 0), (0, pad))).astype(bf16)        # (H, v_pad)
    out_wc = jnp.pad(out_w_t[H:], ((0, 0), (0, pad))).astype(bf16)        # (H, v_pad)
    out_b = jnp.pad(params["out_b"].reshape(1, V).astype(f32),
                    ((0, 0), (0, pad)), constant_values=-1e30)            # (1, v_pad)

    grid_spec = pltpu.PrefetchScalarGridSpec(
        num_scalar_prefetch=0,
        grid=(n_tiles,),
        in_specs=[
            pl.BlockSpec((1, H), lambda j: (0, 0)),              # emb row
            pl.BlockSpec((1, H), lambda j: (0, 0)),              # hidden
            pl.BlockSpec((S, H), lambda j: (0, 0)),              # enc
            pl.BlockSpec((1, H), lambda j: (0, 0)),              # attn_ve
            pl.BlockSpec((H, 3 * H), lambda j: (0, 0)),          # w_ih_e
            pl.BlockSpec((H, 3 * H), lambda j: (0, 0)),          # w_ih_c
            pl.BlockSpec((H, 3 * H), lambda j: (0, 0)),          # w_hh
            pl.BlockSpec((1, 3 * H), lambda j: (0, 0)),          # b_ih
            pl.BlockSpec((1, 3 * H), lambda j: (0, 0)),          # b_hh
            pl.BlockSpec((H, tile_v), lambda j: (0, j)),         # out_wh tile (streamed)
            pl.BlockSpec((H, tile_v), lambda j: (0, j)),         # out_wc tile (streamed)
            pl.BlockSpec((1, tile_v), lambda j: (0, j)),         # out_b tile (streamed)
        ],
        out_specs=(
            pl.BlockSpec((1, tile_v), lambda j: (0, j)),         # raw logits (lane-dense)
            pl.BlockSpec((1, 1), lambda j: (0, 0)),              # log-sum-exp
            pl.BlockSpec((1, H), lambda j: (0, 0)),              # new hidden
            pl.BlockSpec((1, S), lambda j: (0, 0)),              # attention weights
        ),
        scratch_shapes=[
            pltpu.VMEM((1, H), bf16),       # h_new (bf16 MXU operand)
            pltpu.VMEM((1, H), bf16),       # context (bf16 MXU operand)
            pltpu.VMEM((1, 1), f32),        # running max
            pltpu.VMEM((1, 1), f32),        # running sum of exp
        ],
    )

    logits_pad, lse, new_hidden, aw = pl.pallas_call(
        decoder_kernel,
        grid_spec=grid_spec,
        out_shape=(
            jax.ShapeDtypeStruct((1, v_pad), f32),
            jax.ShapeDtypeStruct((1, 1), f32),
            jax.ShapeDtypeStruct((1, H), f32),
            jax.ShapeDtypeStruct((1, S), f32),
        ),
        compiler_params=pltpu.CompilerParams(
            # The single grid axis carries state (j==0 attention/GRU results + the
            # running log-sum-exp), so it must stay "arbitrary".
            # TODO(synk): on v7x, move the vocab loop to a separate pallas_call with
            # dimension_semantics=("parallel",) to shard tiles across both TensorCores.
            dimension_semantics=("arbitrary",),
            # Below v7x's 64 MiB physical VMEM (with headroom); also overrides the
            # 16 MiB scoped default on v5e so large tile_v still double-buffers.
            vmem_limit_bytes=48 * 1024 * 1024,
        ),
    )(emb_row, hidden2d, enc, attn_ve, w_ih_e, w_ih_c, w_hh_t, b_ih, b_hh,
      out_wh, out_wc, out_b)

    # Only the cheap final normalization is left outside the kernel.
    logp = logits_pad[:, :V] - lse
    return logp, new_hidden.reshape(1, 1, H), aw.reshape(1, 1, S)


def decoder_reference(input_idx, hidden, encoder_outputs, params):
    """Pure-JAX reference mirroring the PyTorch forward semantics (f32 math)."""
    H = hidden.shape[-1]
    embedded = params["emb"][input_idx].reshape(1, H)
    h0 = hidden.reshape(1, H)
    cat_he = jnp.concatenate(
        [jnp.broadcast_to(h0, encoder_outputs.shape), encoder_outputs], axis=1)
    energy = cat_he @ params["attn_w"].T + params["attn_b"]
    scores = energy @ params["v"]
    aw = jax.nn.softmax(scores)                                  # (S,)
    context = (aw[:, None] * encoder_outputs).sum(0, keepdims=True)      # (1, H)
    x = jnp.concatenate([embedded, context], axis=1)             # (1, 2H)
    gi = x @ params["gru_w_ih"].T + params["gru_b_ih"]
    gh = h0 @ params["gru_w_hh"].T + params["gru_b_hh"]
    r = jax.nn.sigmoid(gi[:, :H] + gh[:, :H])
    z = jax.nn.sigmoid(gi[:, H:2 * H] + gh[:, H:2 * H])
    n = jnp.tanh(gi[:, 2 * H:] + r * gh[:, 2 * H:])
    h_new = (1 - z) * n + z * h0
    logits = jnp.concatenate([h_new, context], 1) @ params["out_w"].T + params["out_b"]
    logp = jax.nn.log_softmax(logits, axis=1)
    return logp, h_new.reshape(1, 1, H), aw.reshape(1, 1, -1)


def init_params(key, hidden_size, output_size):
    H, V = hidden_size, output_size
    ks = jax.random.split(key, 10)
    u = lambda k, shape, s: jax.random.uniform(k, shape, jnp.float32, -s, s)
    return {
        "emb": jax.random.normal(ks[0], (V, H), jnp.float32),
        "attn_w": u(ks[1], (H, 2 * H), 1.0 / (2 * H) ** 0.5),
        "attn_b": u(ks[2], (H,), 1.0 / (2 * H) ** 0.5),
        "v": jax.random.uniform(ks[3], (H,), jnp.float32),        # torch.rand
        "gru_w_ih": u(ks[4], (3 * H, 2 * H), 1.0 / H ** 0.5),
        "gru_w_hh": u(ks[5], (3 * H, H), 1.0 / H ** 0.5),
        "gru_b_ih": u(ks[6], (3 * H,), 1.0 / H ** 0.5),
        "gru_b_hh": u(ks[7], (3 * H,), 1.0 / H ** 0.5),
        "out_w": u(ks[8], (V, 2 * H), 1.0 / (2 * H) ** 0.5),
        "out_b": u(ks[9], (V,), 1.0 / (2 * H) ** 0.5),
    }


if __name__ == "__main__":
    # V=1200 -> 3 vocab tiles of 512 with 336 padded lanes (exercises grid + padding).
    H, V, S = 32, 1200, 8
    key = jax.random.PRNGKey(0)
    kp, kh, ke = jax.random.split(key, 3)

    params = init_params(kp, H, V)
    # Round weights to bf16-representable values so the bf16-fed kernel and the f32
    # reference differ only by activation rounding at the MXU inputs.
    params = jax.tree_util.tree_map(
        lambda x: x.astype(jnp.bfloat16).astype(jnp.float32), params)

    input_idx = jnp.int32(3)
    hidden = jax.random.normal(kh, (1, 1, H), jnp.float32)
    encoder_outputs = jax.random.normal(ke, (S, H), jnp.float32)

    logp, new_hidden, attn_w = decoder_forward(input_idx, hidden, encoder_outputs, params)
    jax.block_until_ready((logp, new_hidden, attn_w))

    r_logp, r_hidden, r_aw = decoder_reference(input_idx, hidden, encoder_outputs, params)
    # Attention path is f32 end-to-end; GRU / projection feed bf16 activations to the
    # MXU, which loosens parity slightly (weights are bf16-exact by construction).
    assert jnp.allclose(attn_w, r_aw, atol=2e-3, rtol=2e-3), "attn weights mismatch"
    assert jnp.allclose(new_hidden, r_hidden, atol=1e-2, rtol=1e-2), "hidden mismatch"
    assert jnp.allclose(logp, r_logp, atol=1e-2, rtol=1e-2), "log_probs mismatch"

    print("KERNEL_OK")
</pallas_src>

<mosaic_0001>
module attributes {stable_mosaic.version = 11 : i64} {
  func.func @decoder_kernel(%arg0: i32, %arg1: memref<1x32xbf16, #tpu.memory_space<vmem>>, %arg2: memref<1x32xf32, #tpu.memory_space<vmem>>, %arg3: memref<8x32xf32, #tpu.memory_space<vmem>>, %arg4: memref<1x32xf32, #tpu.memory_space<vmem>>, %arg5: memref<32x96xbf16, #tpu.memory_space<vmem>>, %arg6: memref<32x96xbf16, #tpu.memory_space<vmem>>, %arg7: memref<32x96xbf16, #tpu.memory_space<vmem>>, %arg8: memref<1x96xf32, #tpu.memory_space<vmem>>, %arg9: memref<1x96xf32, #tpu.memory_space<vmem>>, %arg10: memref<32x512xbf16, #tpu.memory_space<vmem>>, %arg11: memref<32x512xbf16, #tpu.memory_space<vmem>>, %arg12: memref<1x512xf32, #tpu.memory_space<vmem>>, %arg13: memref<1x512xf32, #tpu.memory_space<vmem>>, %arg14: memref<1x1xf32, #tpu.memory_space<vmem>>, %arg15: memref<1x32xf32, #tpu.memory_space<vmem>>, %arg16: memref<1x8xf32, #tpu.memory_space<vmem>>, %arg17: memref<1x32xbf16, #tpu.memory_space<vmem>>, %arg18: memref<1x32xbf16, #tpu.memory_space<vmem>>, %arg19: memref<1x1xf32, #tpu.memory_space<vmem>>, %arg20: memref<1x1xf32, #tpu.memory_space<vmem>>) attributes {dimension_semantics = [#tpu.dimension_semantics<arbitrary>], iteration_bounds = array<i64: 3>, scalar_prefetch = 0 : i64, scratch_operands = 4 : i64, tpu.core_type = #tpu.core_type<tc>, window_params = [{pipeline_mode = #tpu.pipeline_mode<synchronous>, transform_indices = @transform_0, window_bounds = array<i64: 1, 32>}, {pipeline_mode = #tpu.pipeline_mode<synchronous>, transform_indices = @transform_1, window_bounds = array<i64: 1, 32>}, {pipeline_mode = #tpu.pipeline_mode<synchronous>, transform_indices = @transform_2, window_bounds = array<i64: 8, 32>}, {pipeline_mode = #tpu.pipeline_mode<synchronous>, transform_indices = @transform_3, window_bounds = array<i64: 1, 32>}, {pipeline_mode = #tpu.pipeline_mode<synchronous>, transform_indices = @transform_4, window_bounds = array<i64: 32, 96>}, {pipeline_mode = #tpu.pipeline_mode<synchronous>, transform_indices = @transform_5, window_bounds = array<i64: 32, 96>}, {pipeline_mode = #tpu.pipeline_mode<synchronous>, transform_indices = @transform_6, window_bounds = array<i64: 32, 96>}, {pipeline_mode = #tpu.pipeline_mode<synchronous>, transform_indices = @transform_7, window_bounds = array<i64: 1, 96>}, {pipeline_mode = #tpu.pipeline_mode<synchronous>, transform_indices = @transform_8, window_bounds = array<i64: 1, 96>}, {transform_indices = @transform_9, window_bounds = array<i64: 32, 512>}, {transform_indices = @transform_10, window_bounds = array<i64: 32, 512>}, {transform_indices = @transform_11, window_bounds = array<i64: 1, 512>}, {transform_indices = @transform_12, window_bounds = array<i64: 1, 512>}, {pipeline_mode = #tpu.pipeline_mode<synchronous>, transform_indices = @transform_13, window_bounds = array<i64: 1, 1>}, {pipeline_mode = #tpu.pipeline_mode<synchronous>, transform_indices = @transform_14, window_bounds = array<i64: 1, 32>}, {pipeline_mode = #tpu.pipeline_mode<synchronous>, transform_indices = @transform_15, window_bounds = array<i64: 1, 8>}]} {
    %c0_i32 = arith.constant 0 : i32
    %0 = arith.cmpi eq, %arg0, %c0_i32 : i32
    %1 = arith.extui %0 : i1 to i32
    %c0_i32_0 = arith.constant 0 : i32
    %2 = arith.cmpi ne, %1, %c0_i32_0 : i32
    scf.if %2 {
      %c0_24 = arith.constant 0 : index
      %c0_25 = arith.constant 0 : index
      %32 = vector.load %arg2[%c0_24, %c0_25] : memref<1x32xf32, #tpu.memory_space<vmem>>, vector<1x32xf32>
      %c0_26 = arith.constant 0 : index
      %c0_27 = arith.constant 0 : index
      %33 = vector.load %arg3[%c0_26, %c0_27] : memref<8x32xf32, #tpu.memory_space<vmem>>, vector<8x32xf32>
      %c0_28 = arith.constant 0 : index
      %c0_29 = arith.constant 0 : index
      %34 = vector.load %arg4[%c0_28, %c0_29] : memref<1x32xf32, #tpu.memory_space<vmem>>, vector<1x32xf32>
      %cst_30 = arith.constant dense<0.000000e+00> : vector<1x8xf32>
      %35 = tpu.matmul %34, %33, %cst_30 {dimension_numbers = #tpu.dot_dimension_numbers<[1], [1], [0], [0], [0, 0, 1, 0], [], []>} : vector<1x32xf32>, vector<8x32xf32>, vector<1x8xf32> -> vector<1x8xf32>
      %cst_31 = arith.constant dense<0xFF800000> : vector<1xf32>
      %36 = vector.multi_reduction <maximumf>, %35, %cst_31 [1] : vector<1x8xf32> to vector<1xf32>
      %37 = vector.shape_cast %36 : vector<1xf32> to vector<1x1xf32>
      %38 = vector.broadcast %37 : vector<1x1xf32> to vector<1x8xf32>
      %39 = arith.subf %35, %38 : vector<1x8xf32>
      %40 = math.exp %39 : vector<1x8xf32>
      %cst_32 = arith.constant dense<0.000000e+00> : vector<1xf32>
      %41 = vector.multi_reduction <add>, %40, %cst_32 [1] : vector<1x8xf32> to vector<1xf32>
      %42 = vector.shape_cast %41 : vector<1xf32> to vector<1x1xf32>
      %43 = vector.broadcast %42 : vector<1x1xf32> to vector<1x8xf32>
      %44 = arith.divf %40, %43 : vector<1x8xf32>
      %c0_33 = arith.constant 0 : index
      %c0_34 = arith.constant 0 : index
      %45 = vector.load %arg16[%c0_33, %c0_34] : memref<1x8xf32, #tpu.memory_space<vmem>>, vector<1x8xf32>
      tpu.vector_store %arg16[%c0_33, %c0_34], %44 {strides = array<i32>} : memref<1x8xf32, #tpu.memory_space<vmem>>, vector<1x8xf32>,
      %cst_35 = arith.constant dense<0.000000e+00> : vector<1x32xf32>
      %46 = tpu.matmul %44, %33, %cst_35 {dimension_numbers = #tpu.dot_dimension_numbers<[1], [0], [0], [1], [0, 0, 1, 1], [], []>} : vector<1x8xf32>, vector<8x32xf32>, vector<1x32xf32> -> vector<1x32xf32>
      %47 = arith.truncf %46 : vector<1x32xf32> to vector<1x32xbf16>
      %c0_36 = arith.constant 0 : index
      %c0_37 = arith.constant 0 : index
      %48 = vector.load %arg1[%c0_36, %c0_37] : memref<1x32xbf16, #tpu.memory_space<vmem>>, vector<1x32xbf16>
      %c0_38 = arith.constant 0 : index
      %c0_39 = arith.constant 0 : index
      %49 = vector.load %arg5[%c0_38, %c0_39] : memref<32x96xbf16, #tpu.memory_space<vmem>>, vector<32x96xbf16>
      %cst_40 = arith.constant dense<0.000000e+00> : vector<1x96xf32>
      %50 = tpu.matmul %48, %49, %cst_40 {dimension_numbers = #tpu.dot_dimension_numbers<[1], [0], [0], [1], [0, 0, 1, 1], [], []>} : vector<1x32xbf16>, vector<32x96xbf16>, vector<1x96xf32> -> vector<1x96xf32>
      %c0_41 = arith.constant 0 : index
      %c0_42 = arith.constant 0 : index
      %51 = vector.load %arg6[%c0_41, %c0_42] : memref<32x96xbf16, #tpu.memory_space<vmem>>, vector<32x96xbf16>
      %cst_43 = arith.constant dense<0.000000e+00> : vector<1x96xf32>
      %52 = tpu.matmul %47, %51, %cst_43 {dimension_numbers = #tpu.dot_dimension_numbers<[1], [0], [0], [1], [0, 0, 1, 1], [], []>} : vector<1x32xbf16>, vector<32x96xbf16>, vector<1x96xf32> -> vector<1x96xf32>
      %53 = arith.addf %50, %52 : vector<1x96xf32>
      %c0_44 = arith.constant 0 : index
      %c0_45 = arith.constant 0 : index
      %54 = vector.load %arg8[%c0_44, %c0_45] : memref<1x96xf32, #tpu.memory_space<vmem>>, vector<1x96xf32>
      %55 = arith.addf %53, %54 : vector<1x96xf32>
      %56 = arith.truncf %32 : vector<1x32xf32> to vector<1x32xbf16>
      %c0_46 = arith.constant 0 : index
      %c0_47 = arith.constant 0 : index
      %57 = vector.load %arg7[%c0_46, %c0_47] : memref<32x96xbf16, #tpu.memory_space<vmem>>, vector<32x96xbf16>
      %cst_48 = arith.constant dense<0.000000e+00> : vector<1x96xf32>
      %58 = tpu.matmul %56, %57, %cst_48 {dimension_numbers = #tpu.dot_dimension_numbers<[1], [0], [0], [1], [0, 0, 1, 1], [], []>} : vector<1x32xbf16>, vector<32x96xbf16>, vector<1x96xf32> -> vector<1x96xf32>
      %c0_49 = arith.constant 0 : index
      %c0_50 = arith.constant 0 : index
      %59 = vector.load %arg9[%c0_49, %c0_50] : memref<1x96xf32, #tpu.memory_space<vmem>>, vector<1x96xf32>
      %60 = arith.addf %58, %59 : vector<1x96xf32>
      %61 = vector.extract_strided_slice %55 {offsets = [0, 0], sizes = [1, 32], strides = [1, 1]} : vector<1x96xf32> to vector<1x32xf32>
      %62 = vector.extract_strided_slice %60 {offsets = [0, 0], sizes = [1, 32], strides = [1, 1]} : vector<1x96xf32> to vector<1x32xf32>
      %63 = arith.addf %61, %62 : vector<1x32xf32>
      %64 = arith.negf %63 : vector<1x32xf32>
      %65 = math.exp %64 : vector<1x32xf32>
      %cst_51 = arith.constant 1.000000e+00 : f32
      %66 = vector.broadcast %cst_51 : f32 to vector<1x32xf32>
      %67 = arith.addf %66, %65 : vector<1x32xf32>
      %68 = arith.divf %66, %67 : vector<1x32xf32>
      %69 = vector.extract_strided_slice %55 {offsets = [0, 32], sizes = [1, 32], strides = [1, 1]} : vector<1x96xf32> to vector<1x32xf32>
      %70 = vector.extract_strided_slice %60 {offsets = [0, 32], sizes = [1, 32], strides = [1, 1]} : vector<1x96xf32> to vector<1x32xf32>
      %71 = arith.addf %69, %70 : vector<1x32xf32>
      %72 = arith.negf %71 : vector<1x32xf32>
      %73 = math.exp %72 : vector<1x32xf32>
      %cst_52 = arith.constant 1.000000e+00 : f32
      %74 = vector.broadcast %cst_52 : f32 to vector<1x32xf32>
      %75 = arith.addf %74, %73 : vector<1x32xf32>
      %76 = arith.divf %74, %75 : vector<1x32xf32>
      %77 = vector.extract_strided_slice %55 {offsets = [0, 64], sizes = [1, 32], strides = [1, 1]} : vector<1x96xf32> to vector<1x32xf32>
      %78 = vector.extract_strided_slice %60 {offsets = [0, 64], sizes = [1, 32], strides = [1, 1]} : vector<1x96xf32> to vector<1x32xf32>
      %79 = arith.mulf %68, %78 : vector<1x32xf32>
      %80 = arith.addf %77, %79 : vector<1x32xf32>
      %81 = math.tanh %80 : vector<1x32xf32>
      %cst_53 = arith.constant 1.000000e+00 : f32
      %82 = vector.broadcast %cst_53 : f32 to vector<1x32xf32>
      %83 = arith.subf %82, %76 : vector<1x32xf32>
      %84 = arith.mulf %83, %81 : vector<1x32xf32>
      %85 = arith.mulf %76, %32 : vector<1x32xf32>
      %86 = arith.addf %84, %85 : vector<1x32xf32>
      %c0_54 = arith.constant 0 : index
      %c0_55 = arith.constant 0 : index
      %87 = vector.load %arg15[%c0_54, %c0_55] : memref<1x32xf32, #tpu.memory_space<vmem>>, vector<1x32xf32>
      tpu.vector_store %arg15[%c0_54, %c0_55], %86 {strides = array<i32>} : memref<1x32xf32, #tpu.memory_space<vmem>>, vector<1x32xf32>,
      %88 = arith.truncf %86 : vector<1x32xf32> to vector<1x32xbf16>
      %c0_56 = arith.constant 0 : index
      %c0_57 = arith.constant 0 : index
      %89 = vector.load %arg17[%c0_56, %c0_57] : memref<1x32xbf16, #tpu.memory_space<vmem>>, vector<1x32xbf16>
      tpu.vector_store %arg17[%c0_56, %c0_57], %88 {strides = array<i32>} : memref<1x32xbf16, #tpu.memory_space<vmem>>, vector<1x32xbf16>,
      %c0_58 = arith.constant 0 : index
      %c0_59 = arith.constant 0 : index
      %90 = vector.load %arg18[%c0_58, %c0_59] : memref<1x32xbf16, #tpu.memory_space<vmem>>, vector<1x32xbf16>
      tpu.vector_store %arg18[%c0_58, %c0_59], %47 {strides = array<i32>} : memref<1x32xbf16, #tpu.memory_space<vmem>>, vector<1x32xbf16>,
      %cst_60 = arith.constant 0xFF800000 : f32
      %91 = vector.broadcast %cst_60 : f32 to vector<1x1xf32>
      %c0_61 = arith.constant 0 : index
      %c0_62 = arith.constant 0 : index
      %92 = vector.load %arg19[%c0_61, %c0_62] : memref<1x1xf32, #tpu.memory_space<vmem>>, vector<1x1xf32>
      tpu.vector_store %arg19[%c0_61, %c0_62], %91 {strides = array<i32>} : memref<1x1xf32, #tpu.memory_space<vmem>>, vector<1x1xf32>,
      %cst_63 = arith.constant 0.000000e+00 : f32
      %93 = vector.broadcast %cst_63 : f32 to vector<1x1xf32>
      %c0_64 = arith.constant 0 : index
      %c0_65 = arith.constant 0 : index
      %94 = vector.load %arg20[%c0_64, %c0_65] : memref<1x1xf32, #tpu.memory_space<vmem>>, vector<1x1xf32>
      tpu.vector_store %arg20[%c0_64, %c0_65], %93 {strides = array<i32>} : memref<1x1xf32, #tpu.memory_space<vmem>>, vector<1x1xf32>,
    } else {
    }
    %c0 = arith.constant 0 : index
    %c0_1 = arith.constant 0 : index
    %3 = vector.load %arg17[%c0, %c0_1] : memref<1x32xbf16, #tpu.memory_space<vmem>>, vector<1x32xbf16>
    %c0_2 = arith.constant 0 : index
    %c0_3 = arith.constant 0 : index
    %4 = vector.load %arg10[%c0_2, %c0_3] : memref<32x512xbf16, #tpu.memory_space<vmem>>, vector<32x512xbf16>
    %cst = arith.constant dense<0.000000e+00> : vector<1x512xf32>
    %5 = tpu.matmul %3, %4, %cst {dimension_numbers = #tpu.dot_dimension_numbers<[1], [0], [0], [1], [0, 0, 1, 1], [], []>} : vector<1x32xbf16>, vector<32x512xbf16>, vector<1x512xf32> -> vector<1x512xf32>
    %c0_4 = arith.constant 0 : index
    %c0_5 = arith.constant 0 : index
    %6 = vector.load %arg18[%c0_4, %c0_5] : memref<1x32xbf16, #tpu.memory_space<vmem>>, vector<1x32xbf16>
    %c0_6 = arith.constant 0 : index
    %c0_7 = arith.constant 0 : index
    %7 = vector.load %arg11[%c0_6, %c0_7] : memref<32x512xbf16, #tpu.memory_space<vmem>>, vector<32x512xbf16>
    %cst_8 = arith.constant dense<0.000000e+00> : vector<1x512xf32>
    %8 = tpu.matmul %6, %7, %cst_8 {dimension_numbers = #tpu.dot_dimension_numbers<[1], [0], [0], [1], [0, 0, 1, 1], [], []>} : vector<1x32xbf16>, vector<32x512xbf16>, vector<1x512xf32> -> vector<1x512xf32>
    %9 = arith.addf %5, %8 : vector<1x512xf32>
    %c0_9 = arith.constant 0 : index
    %c0_10 = arith.constant 0 : index
    %10 = vector.load %arg12[%c0_9, %c0_10] : memref<1x512xf32, #tpu.memory_space<vmem>>, vector<1x512xf32>
    %11 = arith.addf %9, %10 : vector<1x512xf32>
    %c0_11 = arith.constant 0 : index
    %c0_12 = arith.constant 0 : index
    %12 = vector.load %arg13[%c0_11, %c0_12] : memref<1x512xf32, #tpu.memory_space<vmem>>, vector<1x512xf32>
    tpu.vector_store %arg13[%c0_11, %c0_12], %11 {strides = array<i32>} : memref<1x512xf32, #tpu.memory_space<vmem>>, vector<1x512xf32>,
    %c0_13 = arith.constant 0 : index
    %c0_14 = arith.constant 0 : index
    %13 = vector.load %arg19[%c0_13, %c0_14] : memref<1x1xf32, #tpu.memory_space<vmem>>, vector<1x1xf32>
    %cst_15 = arith.constant dense<0xFF800000> : vector<1xf32>
    %14 = vector.multi_reduction <maximumf>, %11, %cst_15 [1] : vector<1x512xf32> to vector<1xf32>
    %15 = vector.shape_cast %14 : vector<1xf32> to vector<1x1xf32>
    %16 = arith.maximumf %13, %15 : vector<1x1xf32>
    %c0_16 = arith.constant 0 : index
    %c0_17 = arith.constant 0 : index
    %17 = vector.load %arg20[%c0_16, %c0_17] : memref<1x1xf32, #tpu.memory_space<vmem>>, vector<1x1xf32>
    %18 = arith.subf %13, %16 : vector<1x1xf32>
    %19 = math.exp %18 : vector<1x1xf32>
    %20 = arith.mulf %17, %19 : vector<1x1xf32>
    %21 = vector.broadcast %16 : vector<1x1xf32> to vector<1x512xf32>
    %22 = arith.subf %11, %21 : vector<1x512xf32>
    %23 = math.exp %22 : vector<1x512xf32>
    %cst_18 = arith.constant dense<0.000000e+00> : vector<1xf32>
    %24 = vector.multi_reduction <add>, %23, %cst_18 [1] : vector<1x512xf32> to vector<1xf32>
    %25 = vector.shape_cast %24 : vector<1xf32> to vector<1x1xf32>
    %26 = arith.addf %20, %25 : vector<1x1xf32>
    %c0_19 = arith.constant 0 : index
    %c0_20 = arith.constant 0 : index
    %27 = vector.load %arg20[%c0_19, %c0_20] : memref<1x1xf32, #tpu.memory_space<vmem>>, vector<1x1xf32>
    tpu.vector_store %arg20[%c0_19, %c0_20], %26 {strides = array<i32>} : memref<1x1xf32, #tpu.memory_space<vmem>>, vector<1x1xf32>,
    %c0_21 = arith.constant 0 : index
    %c0_22 = arith.constant 0 : index
    %28 = vector.load %arg19[%c0_21, %c0_22] : memref<1x1xf32, #tpu.memory_space<vmem>>, vector<1x1xf32>
    tpu.vector_store %arg19[%c0_21, %c0_22], %16 {strides = array<i32>} : memref<1x1xf32, #tpu.memory_space<vmem>>, vector<1x1xf32>,
    %c2_i32 = arith.constant 2 : i32
    %29 = arith.cmpi eq, %arg0, %c2_i32 : i32
    %30 = arith.extui %29 : i1 to i32
    %c0_i32_23 = arith.constant 0 : i32
    %31 = arith.cmpi ne, %30, %c0_i32_23 : i32
    scf.if %31 {
      %c0_24 = arith.constant 0 : index
      %c0_25 = arith.constant 0 : index
      %32 = vector.load %arg19[%c0_24, %c0_25] : memref<1x1xf32, #tpu.memory_space<vmem>>, vector<1x1xf32>
      %c0_26 = arith.constant 0 : index
      %c0_27 = arith.constant 0 : index
      %33 = vector.load %arg20[%c0_26, %c0_27] : memref<1x1xf32, #tpu.memory_space<vmem>>, vector<1x1xf32>
      %34 = math.log %33 : vector<1x1xf32>
      %35 = arith.addf %32, %34 : vector<1x1xf32>
      %c0_28 = arith.constant 0 : index
      %c0_29 = arith.constant 0 : index
      %36 = vector.load %arg14[%c0_28, %c0_29] : memref<1x1xf32, #tpu.memory_space<vmem>>, vector<1x1xf32>
      tpu.vector_store %arg14[%c0_28, %c0_29], %35 {strides = array<i32>} : memref<1x1xf32, #tpu.memory_space<vmem>>, vector<1x1xf32>,
    } else {
    }
    return
  }
  func.func @transform_0(%arg0: i32) -> (i32, i32) {
    %c0_i32 = arith.constant 0 : i32
    %c0_i32_0 = arith.constant 0 : i32
    %c0_i32_1 = arith.constant 0 : i32
    return %c0_i32, %c0_i32_0 : i32, i32
  }
  func.func @transform_1(%arg0: i32) -> (i32, i32) {
    %c0_i32 = arith.constant 0 : i32
    %c0_i32_0 = arith.constant 0 : i32
    %c0_i32_1 = arith.constant 0 : i32
    return %c0_i32, %c0_i32_0 : i32, i32
  }
  func.func @transform_2(%arg0: i32) -> (i32, i32) {
    %c0_i32 = arith.constant 0 : i32
    %c0_i32_0 = arith.constant 0 : i32
    %c0_i32_1 = arith.constant 0 : i32
    return %c0_i32, %c0_i32_0 : i32, i32
  }
  func.func @transform_3(%arg0: i32) -> (i32, i32) {
    %c0_i32 = arith.constant 0 : i32
    %c0_i32_0 = arith.constant 0 : i32
    %c0_i32_1 = arith.constant 0 : i32
    return %c0_i32, %c0_i32_0 : i32, i32
  }
  func.func @transform_4(%arg0: i32) -> (i32, i32) {
    %c0_i32 = arith.constant 0 : i32
    %c0_i32_0 = arith.constant 0 : i32
    %c0_i32_1 = arith.constant 0 : i32
    return %c0_i32, %c0_i32_0 : i32, i32
  }
  func.func @transform_5(%arg0: i32) -> (i32, i32) {
    %c0_i32 = arith.constant 0 : i32
    %c0_i32_0 = arith.constant 0 : i32
    %c0_i32_1 = arith.constant 0 : i32
    return %c0_i32, %c0_i32_0 : i32, i32
  }
  func.func @transform_6(%arg0: i32) -> (i32, i32) {
    %c0_i32 = arith.constant 0 : i32
    %c0_i32_0 = arith.constant 0 : i32
    %c0_i32_1 = arith.constant 0 : i32
    return %c0_i32, %c0_i32_0 : i32, i32
  }
  func.func @transform_7(%arg0: i32) -> (i32, i32) {
    %c0_i32 = arith.constant 0 : i32
    %c0_i32_0 = arith.constant 0 : i32
    %c0_i32_1 = arith.constant 0 : i32
    return %c0_i32, %c0_i32_0 : i32, i32
  }
  func.func @transform_8(%arg0: i32) -> (i32, i32) {
    %c0_i32 = arith.constant 0 : i32
    %c0_i32_0 = arith.constant 0 : i32
    %c0_i32_1 = arith.constant 0 : i32
    return %c0_i32, %c0_i32_0 : i32, i32
  }
  func.func @transform_9(%arg0: i32) -> (i32, i32) {
    %c0_i32 = arith.constant 0 : i32
    %c0_i32_0 = arith.constant 0 : i32
    return %c0_i32, %arg0 : i32, i32
  }
  func.func @transform_10(%arg0: i32) -> (i32, i32) {
    %c0_i32 = arith.constant 0 : i32
    %c0_i32_0 = arith.constant 0 : i32
    return %c0_i32, %arg0 : i32, i32
  }
  func.func @transform_11(%arg0: i32) -> (i32, i32) {
    %c0_i32 = arith.constant 0 : i32
    %c0_i32_0 = arith.constant 0 : i32
    return %c0_i32, %arg0 : i32, i32
  }
  func.func @transform_12(%arg0: i32) -> (i32, i32) {
    %c0_i32 = arith.constant 0 : i32
    %c0_i32_0 = arith.constant 0 : i32
    return %c0_i32, %arg0 : i32, i32
  }
  func.func @transform_13(%arg0: i32) -> (i32, i32) {
    %c0_i32 = arith.constant 0 : i32
    %c0_i32_0 = arith.constant 0 : i32
    %c0_i32_1 = arith.constant 0 : i32
    return %c0_i32, %c0_i32_0 : i32, i32
  }
  func.func @transform_14(%arg0: i32) -> (i32, i32) {
    %c0_i32 = arith.constant 0 : i32
    %c0_i32_0 = arith.constant 0 : i32
    %c0_i32_1 = arith.constant 0 : i32
    return %c0_i32, %c0_i32_0 : i32, i32
  }
  func.func @transform_15(%arg0: i32) -> (i32, i32) {
    %c0_i32 = arith.constant 0 : i32
    %c0_i32_0 = arith.constant 0 : i32
    %c0_i32_1 = arith.constant 0 : i32
    return %c0_i32, %c0_i32_0 : i32, i32
  }
}

</mosaic_0001>

<bundles_post_ra>
// kernel: tpu_custom_call.1
= control target key start
LH: loop header
LB: loop body
LE: loop exit
PB: predicated region body
PF: predicated region fallthrough
CT: control target
= control target key end

     0   :  { %s2852_s0 = inlined_call_operand.hbm [shape: bf16[1,32], index: 0, kind: input, shape index: {}]   ;;  %s2853_s1 = inlined_call_operand.vmem [shape: f32[1,32], index: 1, kind: input, shape index: {}]   ;;  %s2854_s2 = inlined_call_operand.hbm [shape: f32[8,32], index: 2, kind: input, shape index: {}]   ;;  %s2855_s3 = inlined_call_operand.vmem [shape: f32[1,32], index: 3, kind: input, shape index: {}]   ;;  %s2856_s4 = inlined_call_operand.hbm [shape: bf16[32,96], index: 4, kind: input, shape index: {}]   ;;  %s2857_s5 = inlined_call_operand.hbm [shape: bf16[32,96], index: 5, kind: input, shape index: {}]   ;;  %s2858_s6 = inlined_call_operand.hbm [shape: bf16[32,96], index: 6, kind: input, shape index: {}]   ;;  %s2859_s7 = inlined_call_operand.vmem [shape: f32[1,96], index: 7, kind: input, shape index: {}]   ;;  %s2860_s8 = inlined_call_operand.vmem [shape: f32[1,96], index: 8, kind: input, shape index: {}]   ;;  %s2861_s9 = inlined_call_operand.hbm [shape: bf16[32,1536], index: 9, kind: input, shape index: {}]   ;;  %s2862_s10 = inlined_call_operand.hbm [shape: bf16[32,1536], index: 10, kind: input, shape index: {}]   ;;  %s2863_s11 = inlined_call_operand.vmem [shape: f32[1,1536], index: 11, kind: input, shape index: {}]   ;;  %s2864_s12 = inlined_call_operand.hbm [shape: f32[1,1536], index: 12, kind: output, shape index: {0}]   ;;  %s2865_s13 = inlined_call_operand.hbm [shape: f32[1,1], index: 13, kind: output, shape index: {1}]   ;;  %s2866_s14 = inlined_call_operand.hbm [shape: f32[1,32], index: 14, kind: output, shape index: {2}]   ;;  %s2867_s15 = inlined_call_operand.hbm [shape: f32[1,8], index: 15, kind: output, shape index: {3}]  }
   0x1   :  { %2890 = sst [smem:[#allocation37_spill]] %s2853_s1 }
   0x2   :  { %2891 = sst [smem:[#allocation38_spill]] %s2854_s2 }
   0x3   :  { %2892 = sst [smem:[#allocation39_spill]] %s2855_s3 }
   0x4   :  { %2893 = sst [smem:[#allocation40_spill]] %s2857_s5 }
   0x5   :  { %2894 = sst [smem:[#allocation41_spill]] %s2859_s7 }
   0x6   :  { %2895 = sst [smem:[#allocation42_spill]] %s2860_s8 }
   0x7   :  { %2896 = sst [smem:[#allocation43_spill]] %s2861_s9 }
   0x8   :  { %2897 = sst [smem:[#allocation44_spill]] %s2864_s12 }
   0x9   :  { %2898 = sst [smem:[#allocation45_spill]] %s2865_s13 }
   0xa   :  { %2899 = sst [smem:[#allocation46_spill]] %s2866_s14 }
   0xb   :  { %2900 = sst [smem:[#allocation47_spill]] %s2867_s15 }
   0xc   :  { %21 = vsyncpa [#allocation7], 0 }
   0xd   :  { %22 = vsyncpa [#allocation10], 0 }
   0xe   :  { %23 = vsyncpa [#allocation13], 0 }
   0xf   :  { %24 = vsyncpa [#allocation16], 0 }
  0x10   :  { %26 = vsyncpa [#allocation16 + $0x1], 0 }
  0x11   :  { %27 = vsyncpa [#allocation8], 0 }
  0x12   :  { %29 = vsyncpa [#allocation8 + $0x1], 0 }
  0x13   :  { %30 = vsyncpa [#allocation20], 0 }
  0x14   :  { %31 = vsyncpa [#allocation23], 0  ;;  %s2439_s18 = smov 0   ;;  %s2441_s19 = smov 0  }
  0x15   :  { %s2443_s20 = smov 0   ;;  %s2445_s21 = smov 0  }
  0x16 LB: > { %2901 = sst [smem:[#allocation31_spill]] %s2320_s18  ;;  %s2460_s22 = sadd.s32 4294967295, %s2332_s21   ;;  %s2332_s21 = sphi %s2445_s21, %s2959_s21   ;;  %s2328_s20 = sphi %s2443_s20, %s2961_s20   ;;  %s2324_s19 = sphi %s2441_s19, %s2963_s19   ;;  %s2320_s18 = sphi %s2439_s18, %s2962_s18  }
  0x17   : > { %2902 = sst [smem:[#allocation32_spill]] %s2328_s20  ;;  %s1680_s23 = sadd.s32 4294967294, %s2332_s21  }
  0x18   : > { %p246_p0 = scmp.ne.s32.totalorder %s2324_s19, %s2320_s18  ;;  %p2869_p1 = scmp.eq.s32.totalorder %s2460_s22, 0 }
  0x19   : > { %p328_p3 = scmp.eq.s32.totalorder %s1680_s23, 2  ;;  %p1681_p5 = scmp.ge.s32.totalorder %s2332_s21, 1 }
  0x1a   : > { %p2469_p4 = por %p2869_p1, %p246_p0  ;;  %p398_p7 = scmp.lt.s32.totalorder %s2332_s21, 4 }
  0x1b   : > { %p2474_p6 = por %p328_p3, %p246_p0  ;;  %s2334_s27 = smov [#allocation9]  }
  0x1c   : > { %s2903_s24 = scalar_select %p2469_p4, 1, 0 }
  0x1d   : > { %s2904_s25 = scalar_select %p2474_p6, 1, 0 }
  0x1e   : > { %p2480_p9 = pnand %p1681_p5, %p398_p7  ;;  %s425_s28 = sshll.u32 %s2334_s27, 4  ;;  %s426_s28 = int_to_ptr.vmem [resolvable:$true] %s425_s28 }
  0x1f   : > { %2905 = sst [smem:[#allocation33_spill]] %s2904_s25  ;;  %s2335_s30 = smov [#allocation12]  }
  0x20   : > { %s2906_s26 = scalar_select %p2480_p9, 1, 0 }
  0x21   : > { %p1838_p10 = pneg %p2480_p9  ;;  %s451_s16 = sshll.u32 %s2335_s30, 4  ;;  %s452_s16 = int_to_ptr.vmem [resolvable:$true] %s451_s16 }
  0x22   : > { %s2001_s23 = scalar_lea.vmem %s426_s28, 128  ;;  %p2009_p5 = scmp.lt.s32.totalorder %s426_s28, %s426_s28 }
  0x23   : > { %p2488_p11 = pnand %p1838_p10, %p2869_p1  ;;  %p2002_p13 = scmp.ne.s32.totalorder %s426_s28, %s2001_s23 }
  0x24   : > { %p2010_p7 = scmp.lt.s32.totalorder %s2001_s23, %s2001_s23 }
  0x25   : > { %s2907_s29 = scalar_select %p2488_p11, 1, 0 }
  0x26   : > { %p2494_p12 = pneg %p2488_p11  ;;  %p2011_p10 = por %p2010_p7, %p2009_p5 }
  0x28   : > { %p2004_p0 = pnand %p2002_p13, %p2494_p12 }
  0x2a   : > { %p2005_p3 = pneg %p2004_p0 }
  0x2c   : > { %p2012_p8 = pnand %p2011_p10, %p2005_p3 }
  0x2e   : > { %2015 = shalt.err (!%p2012_p8)
}
  0x2f   : > { %s2909_s2 = sld [smem:[#allocation38_spill]]  ;;  %s2027_s25 = scalar_lea.vmem %s452_s16, 256 }
  0x30   : > { %p2028_p1 = scmp.ne.s32.totalorder %s452_s16, %s2027_s25  ;;  %p2035_p4 = scmp.lt.s32.totalorder %s452_s16, %s452_s16 }
  0x31   : > { %p2036_p13 = scmp.lt.s32.totalorder %s2027_s25, %s2027_s25 }
  0x32   : > { %p2030_p2 = pnand %p2028_p1, %p2494_p12 }
  0x33   : > { %p2037_p0 = por %p2036_p13, %p2035_p4 }
  0x34   : > { %p2031_p6 = pneg %p2030_p2 }
  0x35   : > { %1844 = dma.hbm_to_vmem [thread:$0]  (!%p2488_p11), %s2909_s2, 128, %s426_s28, [#allocation10]  }
  0x36   : > { %p2038_p9 = pnand %p2037_p0, %p2031_p6 }
  0x38   : > { %2041 = shalt.err (!%p2038_p9)
}
  0x39   : > { %s2873_s23 = smov 64   ;;  %s2875_s28 = smov 4  }
  0x3a   : > { %s2910_s5 = sld [smem:[#allocation40_spill]]  ;;  %s2516_s30 = sadd.s32 1, %s2332_s21  }
  0x3b   : > { %2911 = sst [smem:[#allocation34_spill]] %s2516_s30  ;;  %s233_s2 = sadd.s32 1, %s2328_s20 }
  0x3c   : > { %s230_s18 = ssub.s32 %s2332_s21, %s2516_s30  ;;  %p240_p1 = scmp.ne.s32.totalorder %s2328_s20, %s2324_s19 }
  0x3d   : > { %p231_p2 = scmp.eq.s32.totalorder %s230_s18, 0  ;;  %p241_p4 = scmp.eq.s32.totalorder %s2332_s21, 0 }
  0x3e   : > { %p2912_p6 = scmp.eq.s32.totalorder %s2460_s22, 2  ;;  %p1870_p9 = scmp.lt.s32.totalorder %s2332_s21, 3 }
  0x3f   : > { %s2532_s14 = scalar_select %p231_p2, %s2328_s20, %s233_s2  }
  0x40   : > { %1850 = dma.hbm_to_vmem [thread:$0]  (!%p2488_p11), %s2910_s5, 256, %s452_s16, [#allocation13], %s2873_s23, %s2873_s23, %s2875_s28  }
  0x41   : > { %p2526_p8 = por %p2912_p6, %p240_p1  ;;  %2915 = sst [smem:[#allocation36_spill]] %s2532_s14 }
  0x42   : > { %p242_p3 = por %p241_p4, %p240_p1  ;;  %s484_s25 = sand.u32 1, %s2332_s21  }
  0x43   : > { %s2913_s15 = scalar_select %p2526_p8, 1, 0 }
  0x44   : > { %s486_s27 = sand.u32 1, %s2328_s20   ;;  %s2881_s23 = sshll.u32 %s2332_s21, 8 }
  0x45   : > { %2914 = sst [smem:[#allocation35_spill]] %s2913_s15  ;;  %s2536_s16 = sshll.u32 %s486_s27, 6 }
  0x46   : > { %s2916_s9 = sld [smem:[#allocation43_spill]]  ;;  %s488_s30 = scalar_lea.vmem [#allocation15], %s2536_s16 }
  0x47   : > { %s495_s15 = sshll.u32 %s488_s30, 4  ;;  %p2547_p5 = pnand %p1870_p9, %p242_p3  ;;  %s2551_s15 = int_to_ptr.vmem [resolvable:$true] %s495_s15 }
  0x48   : > { %s2553_s27 = scalar_lea.sflag [#allocation16], %s484_s25 }
  0x49   : > { %s2917_s2 = scalar_select %p2547_p5, 1, 0 }
  0x4a   : > { %p2887_p10 = pneg %p2547_p5 }
  0x4c   : > { %s2544_s18 = scalar_lea.hbm %s2916_s9, %s2881_s23  ;;  %s2047_s30 = scalar_lea.hbm %s2916_s9, 3072 }
  0x4d   : > { %s2042_s14 = scalar_lea.hbm %s2544_s18, 1024  ;;  %p2048_p1 = scmp.lt.s32.totalorder %s2544_s18, %s2916_s9 }
  0x4e   : > { %p2043_p7 = scmp.ne.s32.totalorder %s2544_s18, %s2042_s14  ;;  %p2049_p2 = scmp.lt.s32.totalorder %s2047_s30, %s2042_s14 }
  0x50   : > { %p2045_p13 = pnand %p2887_p10, %p2043_p7  ;;  %p2050_p4 = por %p2049_p2, %p2048_p1 }
  0x52   : > { %p2046_p0 = pneg %p2045_p13 }
  0x54   : > { %p2051_p6 = pnand %p2050_p4, %p2046_p0 }
  0x56   : > { %2054 = shalt.err (!%p2051_p6)
}
  0x57   : > { %s2055_s25 = scalar_lea.vmem %s2551_s15, 1024  ;;  %s2338_s5 = smov [#allocation15]  }
  0x58   : > { %p2056_p9 = scmp.ne.s32.totalorder %s2551_s15, %s2055_s25  ;;  %s2060_s28 = sshll.u32 %s2338_s5, 4  ;;  %s2061_s28 = int_to_ptr.vmem [resolvable:$false] %s2060_s28 }
  0x59   : > { %s2062_s13 = scalar_lea.vmem %s2061_s28, 2048  ;;  %p2063_p13 = scmp.lt.s32.totalorder %s2551_s15, %s2061_s28 }
  0x5a   : > { %p2058_p3 = pnand %p2056_p9, %p2887_p10  ;;  %p2064_p8 = scmp.lt.s32.totalorder %s2062_s13, %s2055_s25 }
  0x5c   : > { %p2059_p7 = pneg %p2058_p3  ;;  %p2065_p11 = por %p2064_p8, %p2063_p13 }
  0x5e   : > { %p2066_p1 = pnand %p2065_p11, %p2059_p7 }
  0x60   : > { %2069 = shalt.err (!%p2066_p1)
}
  0x61   : > { %s2339_s14 = smov 768   ;;  %s2340_s20 = smov 256  }
  0x62   : > { %s2341_s23 = smov 16   ;;  %s2918_s30 = sshll.u32 %s2332_s21, 8 }
  0x63   : > { %1857 = dma.hbm_to_vmem [thread:$0]  (!%p2547_p5), %s2544_s18, 1024, %s2551_s15, %s2553_s27, %s2339_s14, %s2340_s20, %s2341_s23  }
  0x64   : > { %s2588_s5 = scalar_lea.hbm %s2862_s10, %s2918_s30  ;;  %s509_s28 = scalar_lea.vmem [#allocation17], %s2536_s16 }
  0x65   : > { %s2591_s9 = sshll.u32 %s509_s28, 4  ;;  %s2342_s12 = smov [#allocation6]   ;;  %s2611_s9 = int_to_ptr.vmem [resolvable:$true] %s2591_s9 }
  0x66   : > { %s411_s7 = sshll.u32 %s2342_s12, 4  ;;  %s2343_s8 = smov [#allocation11]   ;;  %s412_s7 = int_to_ptr.vmem [resolvable:$true] %s411_s7 }
  0x67   : > { %s438_s1 = sshll.u32 %s2343_s8, 4  ;;  %s2081_s3 = scalar_lea.vmem %s412_s7, 16  ;;  %s439_s1 = int_to_ptr.vmem [resolvable:$true] %s438_s1 }
  0x68   : > { %p2082_p11 = scmp.ne.s32.totalorder %s412_s7, %s2081_s3  ;;  %s2088_s15 = scalar_lea.vmem %s412_s7, 32 }
  0x69   : > { %p2089_p2 = scmp.lt.s32.totalorder %s412_s7, %s412_s7  ;;  %p2090_p4 = scmp.lt.s32.totalorder %s2088_s15, %s2081_s3 }
  0x6a   : > { %p2084_p8 = pnand %p2082_p11, %p2494_p12 }
  0x6b   : > { %p2091_p6 = por %p2090_p4, %p2089_p2 }
  0x6c   : > { %p2085_p0 = pneg %p2084_p8 }
  0x6e   : > { %p2092_p9 = pnand %p2091_p6, %p2085_p0 }
  0x70   : > { %2095 = shalt.err (!%p2092_p9)
}
  0x71   : > { %p2919_p3 = scmp.ne.s32.totalorder %s2907_s29, 0  ;;  %s2107_s8 = scalar_lea.vmem %s439_s1, 256 }
  0x72   : > { %p2108_p7 = scmp.ne.s32.totalorder %s439_s1, %s2107_s8  ;;  %p2115_p11 = scmp.lt.s32.totalorder %s439_s1, %s439_s1 }
  0x73   : > { %1841 = dma.hbm_to_vmem [thread:$0]  (!%p2919_p3), %s2852_s0, 16, %s412_s7, [#allocation7]  }
  0x74   : > { %p2110_p13 = pnand %p2108_p7, %p2494_p12  ;;  %p2116_p8 = scmp.lt.s32.totalorder %s2107_s8, %s2107_s8 }
  0x76   : > { %p2111_p1 = pneg %p2110_p13  ;;  %p2117_p10 = por %p2116_p8, %p2115_p11 }
  0x78   : > { %p2118_p5 = pnand %p2117_p10, %p2111_p1 }
  0x7a   : > { %2121 = shalt.err (!%p2118_p5)
}
  0x7b   : > { %s2920_s3 = smov 4   ;;  %s2921_s12 = smov 64  }
  0x7c   : > { %1847 = dma.hbm_to_vmem [thread:$0]  (!%p2919_p3), %s2856_s4, 256, %s439_s1, [#allocation10], %s2921_s12, %s2921_s12, %s2920_s3  }
  0x7d   : > { %s2344_s7 = smov [#allocation14]  }
  0x7e   : > { %s464_s25 = sshll.u32 %s2344_s7, 4  ;;  %s465_s25 = int_to_ptr.vmem [resolvable:$true] %s464_s25 }
  0x7f   : > { %s2133_s28 = scalar_lea.vmem %s465_s25, 256  ;;  %p2141_p2 = scmp.lt.s32.totalorder %s465_s25, %s465_s25 }
  0x80   : > { %p2134_p0 = scmp.ne.s32.totalorder %s465_s25, %s2133_s28  ;;  %p2142_p4 = scmp.lt.s32.totalorder %s2133_s28, %s2133_s28 }
  0x82   : > { %p2136_p5 = pnand %p2134_p0, %p2494_p12  ;;  %p2143_p6 = por %p2142_p4, %p2141_p2 }
  0x84   : > { %p2137_p10 = pneg %p2136_p5 }
  0x86   : > { %p2144_p9 = pnand %p2143_p6, %p2137_p10 }
  0x88   : > { %2147 = shalt.err (!%p2144_p9)
}
  0x89   : > { %1853 = dma.hbm_to_vmem [thread:$0]  (!%p2919_p3), %s2858_s6, 256, %s465_s25, [#allocation13], %s2921_s12, %s2921_s12, %s2920_s3  }
  0x8a   : > { %s2148_s17 = scalar_lea.hbm %s2588_s5, 1024  ;;  %p2922_p7 = scmp.ne.s32.totalorder %s2917_s2, 0 }
  0x8b   : > { %p2149_p12 = scmp.ne.s32.totalorder %s2588_s5, %s2148_s17  ;;  %s2153_s29 = scalar_lea.hbm %s2862_s10, 3072 }
  0x8c   : > { %p2923_p13 = pneg %p2922_p7  ;;  %p2154_p8 = scmp.lt.s32.totalorder %s2588_s5, %s2862_s10 }
  0x8d   : > { %p2155_p0 = scmp.lt.s32.totalorder %s2153_s29, %s2148_s17 }
  0x8e   : > { %p2151_p1 = pnand %p2149_p12, %p2923_p13 }
  0x8f   : > { %p2156_p5 = por %p2155_p0, %p2154_p8 }
  0x90   : > { %p2152_p11 = pneg %p2151_p1 }
  0x92   : > { %p2157_p10 = pnand %p2156_p5, %p2152_p11 }
  0x94   : > { %2160 = shalt.err (!%p2157_p10)
}
  0x95   : > { %s2161_s3 = scalar_lea.vmem %s2611_s9, 1024  ;;  %p2924_p2 = pmov %p2923_p13 }
  0x96   : > { %p2162_p3 = scmp.ne.s32.totalorder %s2611_s9, %s2161_s3  ;;  %s2345_s12 = smov [#allocation17]  }
  0x97   : > { %s2166_s13 = sshll.u32 %s2345_s12, 4  ;;  %s2167_s13 = int_to_ptr.vmem [resolvable:$false] %s2166_s13 }
  0x98   : > { %p2164_p4 = pnand %p2162_p3, %p2924_p2  ;;  %s2168_s7 = scalar_lea.vmem %s2167_s13, 2048 }
  0x99   : > { %p2169_p9 = scmp.lt.s32.totalorder %s2611_s9, %s2167_s13  ;;  %p2170_p12 = scmp.lt.s32.totalorder %s2168_s7, %s2161_s3 }
  0x9a   : > { %p2165_p6 = pneg %p2164_p4 }
  0x9b   : > { %p2171_p13 = por %p2170_p12, %p2169_p9 }
  0x9d   : > { %p2172_p1 = pnand %p2171_p13, %p2165_p6 }
  0x9f   : > { %2175 = shalt.err (!%p2172_p1)
}
  0xa0   : > { %1860 = dma.hbm_to_vmem [thread:$0]  (!%p2922_p7), %s2588_s5, 1024, %s2611_s9, %s2553_s27, %s2339_s14, %s2340_s20, %s2341_s23  }
  0xa1   : > { %p2925_p11 = scmp.ne.s32.totalorder %s2906_s26, 0 }
  0xa2   : > { %p2926_p8 = scmp.eq.s32.totalorder (!%p2925_p11), %s2460_s22, 0 }
  0xa3   : > { %536 = sbr.rel (%p2925_p11) target bundleno = 2349 (0x92d), region = 68 }
  0xa8   : > { %2291 = dma.done.wait (%p2926_p8), [#allocation7], 16   ;;  %p2927_p0 = pmov %p2926_p8 }
  0xaa   : > { %2293 = vsyncadd (%p2927_p0), [#allocation7], 4294967280  ;;  %p2928_p5 = pmov %p2927_p0 }
  0xab   : > { %p2929_p10 = pmov %p2927_p0 }
  0xac   : > { %2295 = dma.done.wait (%p2928_p5), [#allocation10], 384  }
  0xad   : > { %2297 = vsyncadd (%p2929_p10), [#allocation10], 4294966912  ;;  %p2930_p3 = pmov %p2927_p0 }
  0xae   : > { %p2931_p7 = pmov %p2927_p0 }
  0xaf   : > { %2299 = dma.done.wait (%p2930_p3), [#allocation13], 512  }
  0xb0   : > { %2301 = vsyncadd (%p2931_p7), [#allocation13], 4294966784  ;;  %s558_s9 = sand.u32 1, %s2460_s22   ;;  %s2665_s26 = sand.u32 1, %s2324_s19  }
  0xb1   : > { %s1700_s2 = sshll.u32 %s2665_s26, 6  ;;  %s559_s27 = scalar_lea.sflag [#allocation16], %s558_s9 }
  0xb2   : > { %s2668_s14 = scalar_lea.vmem [#allocation15], %s1700_s2  ;;  %p2932_p2 = scmp.ne.s32.totalorder %s2903_s24, 0 }
  0xb4   : > { %2303 = dma.done.wait (%p2932_p2), %s559_s27, 2048  }
  0xb5   : > { %2305 = vsyncadd (%p2932_p2), %s559_s27, 4294965248  ;;  %s1702_s20 = sshll.u32 %s2665_s26, 2  ;;  %s1703_s23 = sshll.u32 %s2460_s22, 2 }
  0xb6   : > { %p630_p4 = scmp.lt.s32.totalorder %s1703_s23, 11  ;;  %s2682_s1 = scalar_lea.vmem [#allocation17], %s1700_s2 }
  0xb7   : > { %s2684_s15 = scalar_lea.vmem [#allocation18], %s1702_s20  ;;  %p2933_p6 = scmp.ne.s32.totalorder %s2460_s22, 0 }
  0xb8   : > { %s2965_s23 = smov (!%p630_p4, %s1703_s23), 11  ;;  %s2934_s16 = sld [smem:[#allocation39_spill]] (!%p2933_p6) }
  0xb9   : > { %s632_s28 = scalar_lea.vmem %s2863_s11, %s2965_s23  ;;  %639 = sbr.rel (%p2933_p6) target bundleno = 1591 (0x637), region = 100 }
  0xba   : > { %s2937_s8 = sld [smem:[#allocation37_spill]] (!%p2933_p6)  ;;  %s2349_s13 = smov (!%p2933_p6), 64  }
  0xbb   : > { %s2938_s12 = sld [smem:[#allocation42_spill]] (!%p2933_p6)  ;;  %s2350_s27 = smov (!%p2933_p6), 32  }
  0xbc   : > { %s2939_s2 = sld [smem:[#allocation41_spill]] (!%p2933_p6)  ;;  %s2351_s20 = smov (!%p2933_p6), 96  }
  0xbe   : > { %vm1058_vm0 = vcmask 0   ;;  %v641_v0 = vld [vmem:[#allocation9] sm:$0xff]  ;;  %vm643_vm1 = vcmask 261120   ;;  %v2346_v1 = vmov 0.0   ;;  %v2347_v2 = vmov -inf   ;;  %v1939_v13 = vld [vmem:[#allocation12] sm:$0xff]  }
  0xbf   : > { %1766 = vmatprep.subr.mxu0 %v2346_v1  ;;  %1059 = vst.msk [vmem:[#allocation4] sm:$0x1] %vm1058_vm0, %v2347_v2  ;;  %1060 = vst.msk [vmem:[#allocation5] sm:$0x1] %vm1058_vm0, %v2346_v1  ;;  %v642_v3 = vld [vmem:[%s2934_s16] sm:$0x1]  ;;  %1776 = vmatprep.subr.bf16.mxu1 %v2346_v1  ;;  %v1015_v51 = vlaneseq }
  0xc0   : > { %1767 = vmatpush3.xpose.msk.msra.mxu0 %vm643_vm1, %v641_v0  ;;  %vm2348_vm2 = vmmov 0   ;;  %vm720_vm3 = vcmask 57344   ;;  %v1937_v12 = vld [vmem:[#allocation12 + $0x8] sm:$0xff]   ;;  %vm733_vm4 = vcmask 64512   ;;  %v1938_v16 = vld [vmem:[#allocation11 + $0x8] sm:$0xff]   ;;  %v1940_v18 = vld [vmem:[#allocation11] sm:$0xff]  }
  0xc1   : > { %1768 = vmatprep.mubr.msk.f32.mxu0 %vm2348_vm2, %v2346_v1  ;;  %1771 = vmatprep.subr.mxu0 %v2346_v1  ;;  %v808_v19 = vld [vmem:[#allocation6] sm:$0x1]  ;;  %vm1028_vm5 = vcmask 253952   ;;  %vm1050_vm6 = vsmask.f32 256  ;;  %v1941_v21 = vld [vmem:[#allocation14 + $0x8] sm:$0xff]  }
  0xc2   : > { %1780 = vmatprep.mubr.msk.bf16.mxu1 %vm2348_vm2, %v2346_v1  ;;  %1777 = vmatpush3.bf16.msra.mxu1 %v1937_v12  ;;  %vm2714_vm7 = vmand %vm1028_vm5, %vm1050_vm6  ;;  %v1055_v23 = vld [vmem:[#allocation3] sm:$0x1]  ;;  %v1942_v27 = vld [vmem:[#allocation14] sm:$0xff]   ;;  %v1016_v52 = vshrl.u32 %v1015_v51, 7  ;;  %v2352_v61 = vmov 1966171168  }
  0xc3   : > { %1769 = vmatmul.mubr.msk.f32.vlgmr.msra.gmra.mxu0 %vm643_vm1, %v642_v3  ;;  %1778 = vmatprep.subr.bf16.mxu1 %v2346_v1  ;;  %v640_v28 = vld [vmem:[%s2937_s8] sm:$0x1]  ;;  %v1033_v62 = vunpack.c.l.s4 %v2352_v61 }
  0xc4   : > { %1772 = vmatpush3.msra.mxu0 %v641_v0  ;;  %1773 = vmatprep.mubr.msk.f32.mxu0 %vm2348_vm2, %v2346_v1  ;;  %v929_v29 = vpack.c.bf16 %v640_v28, %v640_v28  ;;  %v934_v38 = vld [vmem:[%s2938_s12] sm:$0x1]  ;;  %v1017_v53 = vsub.s32 0, %v1016_v52 }
  0xc5   : > { %1784 = vmatprep.subr.bf16.mxu0 %v2346_v1  ;;  %v927_v45 = vld [vmem:[%s2939_s2] sm:$0x1] }
  0xc6   : > { %1779 = vmatpush3.bf16.msra.mxu1 %v1939_v13  ;;  %v1018_v57 = vrot.slane %v640_v28, %v1017_v53 }
  0xc7   : > { %1792 = vmatprep.subr.bf16.mxu1 %v2346_v1 }
 0x183   : > { %v716_v4 = vpop.f32.mrf.mxu0 }
 0x184   : > { %v721_v5 = vsel %vm720_vm3, %v716_v4, -inf }
 0x185   : > { %722 = vmax.xlane.f32.xlu0 %v721_v5  ;;  %v1770_v6 = vpop.f32.mrf.mxu0 }
 0x20e   : > { %v723_v7 = vpop.xlane.xlu0 %722 }
 0x20f   : > { %v724_v8 = vsub.f32 %v716_v4, %v723_v7 }
 0x211   : > { %v725_v9 = vmul.f32 1.442695, %v724_v8 }
 0x213   : > { %1943 = vpow2.f32 %v725_v9 }
 0x220   : > { %v1944_v10 = vpop.eup %1943 }
 0x221   : > { %v727_v11 = vsel %vm720_vm3, %v1944_v10, 0.0 }
 0x222   : > { %728 = vadd.xlane.f32.xlu0 %v727_v11 }
 0x2ab   : > { %v729_v14 = vpop.xlane.xlu0 %728 }
 0x2ac   : > { %1945 = vrcp.f32 %v729_v14 }
 0x2b9   : > { %v1946_v15 = vpop.eup %1945 }
 0x2ba   : > { %v731_v17 = vmul.f32 %v1946_v15, %v1944_v10  ;;  %v1052_v10 = vld [vmem:[#allocation2] sm:$0x1] }
 0x2bc   : > { %732 = vst.msk [vmem:[#allocation22] sm:$0x1] %vm720_vm3, %v731_v17  ;;  %1774 = vmatmul.mubr.msk.f32.vlgmr.msra.gmra.mxu0 %vm733_vm4, %v731_v17 }
 0x2bd   : > { %1785 = vmatpush3.bf16.msra.mxu0 %v1938_v16  ;;  %1788 = vmatprep.mubr.msk.bf16.mxu0 %vm2348_vm2, %v2346_v1 }
 0x2be   : > { %1786 = vmatprep.subr.bf16.mxu0 %v2346_v1 }
 0x2c1   : > { %1787 = vmatpush3.bf16.msra.mxu0 %v1940_v18 }
 0x2c4   : > { %1789 = vmatmul.mubr.msk.bf16.vlgmr.msra.gmra.mxu0 %vm643_vm1, %v808_v19 }
 0x37c   : > { %v803_v20 = vpop.f32.mrf.mxu0 }
 0x37d   : > { %v807_v24 = vpack.c.bf16 %v803_v20, %v803_v20 }
 0x37e   : > { %v1775_v25 = vpop.f32.mrf.mxu0 }
 0x37f   : > { %1781 = vmatmul.mubr.msk.bf16.vlgmr.msra.gmra.mxu1 %vm643_vm1, %v807_v24  ;;  %v1056_v26 = vsel %vm2714_vm7, %v807_v24, %v1055_v23 }
 0x380   : > { %1793 = vmatpush3.bf16.msra.mxu1 %v1941_v21  ;;  %1796 = vmatprep.mubr.msk.bf16.mxu1 %vm2348_vm2, %v2346_v1  ;;  %1057 = vst [vmem:[#allocation3] sm:$0x1] %v1056_v26 }
 0x381   : > { %1794 = vmatprep.subr.bf16.mxu1 %v2346_v1  ;;  %v1034_v1 = vunpack.c.0.s8 %v1033_v62 }
 0x383   : > { %v1037_v6 = vsub.s32 %v1034_v1, %v1016_v52 }
 0x384   : > { %1795 = vmatpush3.bf16.msra.mxu1 %v1942_v27  ;;  %v921_v30 = vpop.f32.mrf.mxu0 }
 0x386   : > { %v1790_v31 = vpop.f32.mrf.mxu0 }
 0x387   : > { %1797 = vmatmul.mubr.msk.bf16.vlgmr.msra.gmra.mxu1 %vm643_vm1, %v929_v29 }
 0x388   : > { %v924_v32 = vpop.f32.mrf.mxu0 }
 0x38a   : > { %v1791_v33 = vpop.f32.mrf.mxu0 }
 0x43f   : > { %v866_v34 = vpop.f32.mrf.mxu1 }
 0x440   : > { %v922_v44 = vadd.f32 %v921_v30, %v866_v34 }
 0x441   : > { %v1782_v35 = vpop.f32.mrf.mxu1 }
 0x442   : > { %v928_v46 = vadd.f32 %v927_v45, %v922_v44 }
 0x443   : > { %v869_v36 = vpop.f32.mrf.mxu1 }
 0x445   : > { %v1783_v37 = vpop.f32.mrf.mxu1 }
 0x447   : > { %v984_v39 = vpop.f32.mrf.mxu1 }
 0x448   : > { %v985_v40 = vadd.f32 %v984_v39, %v934_v38 }
 0x449   : > { %v1798_v41 = vpop.f32.mrf.mxu1 }
 0x44a   : > { %998 = vrot.lane.b32.xlu1 %v985_v40, %s2349_s13  ;;  %v990_v47 = vadd.f32 %v985_v40, %v928_v46 }
 0x44b   : > { %v987_v42 = vpop.f32.mrf.mxu1 }
 0x44c   : > { %v1717_v48 = vmul.f32 -1.442695, %v990_v47 }
 0x44d   : > { %v1799_v43 = vpop.f32.mrf.mxu1 }
 0x44e   : > { %1947 = vpow2.f32 %v1717_v48 }
 0x45b   : > { %v1948_v49 = vpop.eup %1947 }
 0x45c   : > { %v994_v50 = vadd.f32 1.0, %v1948_v49 }
 0x45e   : > { %1949 = vrcp.f32 %v994_v50 }
 0x46b   : > { %v1950_v54 = vpop.eup %1949 }
 0x46c   : > { %v1008_v0 = vsub.f32 1.0, %v1950_v54 }
 0x4bc   : > { %v999_v55 = vpop.permute.xlu1 %998 }
 0x4bd   : > { %v1001_v56 = vmul.f32 %v1950_v54, %v999_v55 }
 0x4bf   : > { %1003 = vrot.lane.b32.xlu1 %v1001_v56, %s2349_s13 }
 0x4c3   : > { %1019 = vrot.lane.b32.xlu1 %v1018_v57, %s2350_s27 }
 0x531   : > { %v1004_v58 = vpop.permute.xlu1 %1003 }
 0x532   : > { %v1006_v59 = vadd.f32 %v1004_v58, %v928_v46 }
 0x534   : > { %1951 = vtanh.f32 %v1006_v59 }
 0x535   : > { %v1020_v63 = vpop.permute.xlu1 %1019 }
 0x536   : > { %v1022_v3 = vmul.f32 %v1950_v54, %v1020_v63 }
 0x541   : > { %v1952_v60 = vpop.eup %1951 }
 0x542   : > { %1010 = vrot.lane.b32.xlu0 %v1952_v60, %s2351_s20 }
 0x5b4   : > { %v1011_v2 = vpop.permute.xlu0 %1010 }
 0x5b5   : > { %v1013_v4 = vmul.f32 %v1011_v2, %v1008_v0 }
 0x5b7   : > { %v1023_v5 = vadd.f32 %v1022_v3, %v1013_v4 }
 0x5b9   : > { %v1030_v7 = vpack.c.bf16 %v1023_v5, %v1023_v5 }
 0x5bb   : > { %v1038_v8 = vrot.slane %v1030_v7, %v1037_v6 }
 0x5bd   : > { %v1045_v9 = vrot.slane %v1038_v8, %v1037_v6 }
 0x5bf   : > { %1046 = vrot.lane.b32.xlu1 %v1045_v9, %s2351_s20 }
 0x5c3   : > { %1025 = vrot.lane.b32.xlu1 %v1023_v5, %s2351_s20 }
 0x631   : > { %v1047_v11 = vpop.permute.xlu1 %1046 }
 0x632   : > { %v1053_v12 = vsel %vm2714_vm7, %v1047_v11, %v1052_v10 }
 0x633   : > { %1054 = vst [vmem:[#allocation2] sm:$0x1] %v1053_v12 }
 0x635   : > { %v1026_v13 = vpop.permute.xlu1 %1025 }
 0x636   : > { %1029 = vst.msk [vmem:[#allocation21] sm:$0x1] %vm1028_vm5, %v1026_v13 }
 0x637 PF: > { %v1954_v14 = vld [vmem:[%s2682_s1 + $0x24] ss:$16 sps:$4 sm:$0xff]   ;;  %v1956_v15 = vld [vmem:[%s2682_s1 + $0x2c] ss:$16 sps:$4 sm:$0xff]   ;;  %v2353_v16 = vmov 0   ;;  %vm1119_vm8 = vcmask 261120   ;;  %v1332_v33 = vlaneseq }
 0x638   : > { %1155 = vmatprep.mubr.bf16.mxu0 %v2353_v16  ;;  %1196 = vmatprep.mubr.bf16.mxu1 %v2353_v16  ;;  %v1958_v17 = vld [vmem:[%s2682_s1 + $0x20] ss:$16 sps:$4 sm:$0xff]   ;;  %v1959_v18 = vld [vmem:[%s2682_s1 + $0x28] ss:$16 sps:$4 sm:$0xff]   ;;  %v1960_v19 = vld [vmem:[%s2682_s1 + $0x4] ss:$16 sps:$4 sm:$0xff]  }
 0x639   : > { %1135 = vmatprep.subr.bf16.mxu0 %v1954_v14  ;;  %1953 = vset.pattern.permute.xlu0 %v2353_v16  ;;  %v1962_v20 = vld [vmem:[%s2682_s1 + $0xc] ss:$16 sps:$4 sm:$0xff]   ;;  %v1964_v21 = vld [vmem:[%s2682_s1] ss:$16 sps:$4 sm:$0xff]   ;;  %v1965_v22 = vld [vmem:[%s2682_s1 + $0x8] ss:$16 sps:$4 sm:$0xff]  }
 0x63a   : > { %1176 = vmatprep.subr.bf16.mxu1 %v1956_v15  ;;  %1136 = vmatpush1.bf16.msra.mxu0 %v1958_v17  ;;  %v1070_v23 = vld [vmem:[#allocation3] sm:$0x1]  ;;  %v1968_v25 = vld [vmem:[%s2668_s14 + $0x24] ss:$16 sps:$4 sm:$0xff]   ;;  %v1969_v26 = vld [vmem:[%s2668_s14 + $0x28] ss:$16 sps:$4 sm:$0xff]  }
 0x63b   : > { %1177 = vmatpush1.bf16.msra.mxu1 %v1959_v18  ;;  %1137 = vmatprep.subr.bf16.mxu0 %v1960_v19  ;;  %v1966_v24 = vld [vmem:[%s2668_s14 + $0x20] ss:$16 sps:$4 sm:$0xff]   ;;  %v1971_v27 = vld [vmem:[%s2668_s14 + $0x2c] ss:$16 sps:$4 sm:$0xff]   ;;  %v1974_v28 = vld [vmem:[%s2668_s14 + $0x4] ss:$16 sps:$4 sm:$0xff]  }
 0x63c   : > { %1178 = vmatprep.subr.bf16.mxu1 %v1962_v20  ;;  %v1977_v29 = vld [vmem:[%s2668_s14 + $0xc] ss:$16 sps:$4 sm:$0xff]   ;;  %v1972_v30 = vld [vmem:[%s2668_s14] ss:$16 sps:$4 sm:$0xff]   ;;  %v1975_v31 = vld [vmem:[%s2668_s14 + $0x8] ss:$16 sps:$4 sm:$0xff]  }
 0x63d   : > { %v1061_v32 = vld [vmem:[#allocation2] sm:$0x1]  ;;  %v2757_v34 = vshrl.u32 %v1332_v33, 7  ;;  %v1330_v43 = vld [vmem:[%s632_s28] sm:$0xf]  ;;  %vm1391_vm9 = vcmask 1040384  }
 0x63e   : > { %1138 = vmatpush1.bf16.msra.mxu0 %v1964_v21  ;;  %v2354_v45 = vmov 1966171168   ;;  %vm1387_vm10 = vcmp.lt.s32.totalorder %v1332_v33, 512  ;;  %v1390_v21 = vld [vmem:[#allocation4] sm:$0x1]  ;;  %vm1438_vm11 = vcmask 0  }
 0x63f   : > { %1179 = vmatpush1.bf16.msra.mxu1 %v1965_v22  ;;  %1260 = vmatprep.subr.bf16.mxu0 %v1968_v25  ;;  %v1334_v39 = vsub.s32 0, %v2757_v34  ;;  %v1342_v40 = vsub.s32 2, %v2757_v34  ;;  %v1338_v44 = vsub.s32 1, %v2757_v34  ;;  %v1363_v46 = vunpack.c.l.s4 %v2354_v45  ;;  %p1738_p9 = scmp.ne.s32.totalorder %s2460_s22, 2 }
 0x640   : > { %1301 = vmatprep.subr.bf16.mxu1 %v1971_v27  ;;  %v1346_v47 = vsub.s32 3, %v2757_v34 }
 0x641   : > { %1726 = vmatmul.mubr.msk.bf16.vlgmr.msra.gmra.mxu0 %vm1119_vm8, %v1070_v23  ;;  %v1335_v50 = vrot.slane %v1330_v43, %v1334_v39  ;;  %v1343_v51 = vrot.slane %v1330_v43, %v1342_v40  ;;  %v1339_v54 = vrot.slane %v1330_v43, %v1338_v44  ;;  %v1364_v57 = vunpack.c.0.s8 %v1363_v46 }
 0x642   : > { %1727 = vmatmul.mubr.msk.bf16.vlgmr.msra.gmra.mxu1 %vm1119_vm8, %v1070_v23  ;;  %1261 = vmatpush1.bf16.msra.mxu0 %v1966_v24  ;;  %v1347_v58 = vrot.slane %v1330_v43, %v1346_v47 }
 0x643   : > { %1302 = vmatpush1.bf16.msra.mxu1 %v1969_v26  ;;  %1262 = vmatprep.subr.bf16.mxu0 %v1974_v28  ;;  %v1367_v4 = vsub.s32 %v1364_v57, %v2757_v34 }
 0x644   : > { %1303 = vmatprep.subr.bf16.mxu1 %v1977_v29  ;;  %1280 = vmatprep.mubr.bf16.mxu0 %v2353_v16 }
 0x645   : > { %1321 = vmatprep.mubr.bf16.mxu1 %v2353_v16 }
 0x646   : > { %1263 = vmatpush1.bf16.msra.mxu0 %v1972_v30 }
 0x647   : > { %1304 = vmatpush1.bf16.msra.mxu1 %v1975_v31 }
 0x649   : > { %1736 = vmatmul.mubr.msk.bf16.vlgmr.msra.gmra.mxu0 %vm1119_vm8, %v1061_v32 }
 0x64a   : > { %1737 = vmatmul.mubr.msk.bf16.vlgmr.msra.gmra.mxu1 %vm1119_vm8, %v1061_v32 }
 0x701   : > { %v1157_v35 = vpop.f32.mrf.mxu0 }
 0x702   : > { %v1198_v36 = vpop.f32.mrf.mxu1 }
 0x703   : > { %v1159_v37 = vpop.f32.mrf.mxu0 }
 0x704   : > { %v1200_v38 = vpop.f32.mrf.mxu1 }
 0x705   : > { %v1161_v41 = vpop.f32.mrf.mxu0 }
 0x706   : > { %v1202_v42 = vpop.f32.mrf.mxu1 }
 0x707   : > { %v1162_v48 = vpop.f32.mrf.mxu0 }
 0x708   : > { %v1203_v49 = vpop.f32.mrf.mxu1  ;;  %v1402_v48 = vld [vmem:[#allocation5] sm:$0x1] }
 0x709   : > { %v1282_v52 = vpop.f32.mrf.mxu0 }
 0x70a   : > { %v1323_v53 = vpop.f32.mrf.mxu1  ;;  %v1283_v55 = vadd.f32 %v1282_v52, %v1157_v35 }
 0x70b   : > { %v1324_v56 = vadd.f32 %v1323_v53, %v1198_v36  ;;  %v1284_v59 = vpop.f32.mrf.mxu0 }
 0x70c   : > { %v1325_v60 = vpop.f32.mrf.mxu1  ;;  %v1352_v61 = vadd.f32 %v1335_v50, %v1283_v55  ;;  %v1285_v63 = vadd.f32 %v1284_v59, %v1159_v37 }
 0x70d   : > { %v1354_v62 = vadd.f32 %v1343_v51, %v1324_v56  ;;  %v1326_v0 = vadd.f32 %v1325_v60, %v1200_v38  ;;  %v1286_v1 = vpop.f32.mrf.mxu0 }
 0x70e   : > { %v1327_v2 = vpop.f32.mrf.mxu1  ;;  %v1353_v3 = vadd.f32 %v1339_v54, %v1285_v63  ;;  %v1392_v8 = vsel %vm1391_vm9, %v1352_v61, -inf }
 0x70f   : > { %v1355_v5 = vadd.f32 %v1347_v58, %v1326_v0  ;;  %v1287_v6 = vpop.f32.mrf.mxu0  ;;  %v1394_v9 = vsel %vm1391_vm9, %v1354_v62, -inf }
 0x710   : > { %v1328_v7 = vpop.f32.mrf.mxu1  ;;  %v1360_v10 = vcombine.low %v1352_v61, %v1353_v3  ;;  %v1393_v12 = vsel %vm1391_vm9, %v1353_v3, -inf }
 0x711   : > { %v1361_v11 = vcombine.low %v1354_v62, %v1355_v5  ;;  %v1395_v13 = vsel %vm1391_vm9, %v1355_v5, -inf  ;;  %v1396_v14 = vmax.f32 %v1392_v8, %v1393_v12 }
 0x712   : > { %v1397_v15 = vmax.f32 %v1394_v9, %v1395_v13  ;;  %v1368_v16 = vrot.slane %v1360_v10, %v1367_v4 }
 0x713   : > { %v1375_v17 = vrot.slane %v1361_v11, %v1367_v4 }
 0x714   : > { %v1398_v18 = vmax.f32 %v1396_v14, %v1397_v15 }
 0x715   : > { %v1376_v19 = vcombine.low %v1368_v16, %v1375_v17 }
 0x716   : > { %1399 = vmax.xlane.f32.xlu0 %v1398_v18 }
 0x717   : > { %v1383_v20 = vrot.slane %v1376_v19, %v1367_v4 }
 0x719   : > { %1389 = vst.msk [vmem:[%s2684_s15] sm:$0xf] %vm1387_vm10, %v1383_v20 }
 0x79f   : > { %v1400_v22 = vpop.xlane.xlu0 %1399 }
 0x7a0   : > { %v1401_v23 = vmax.f32 %v1390_v21, %v1400_v22 }
 0x7a2   : > { %v1403_v24 = vsub.f32 %v1390_v21, %v1401_v23  ;;  %1440 = vst.msk [vmem:[#allocation4] sm:$0x1] %vm1438_vm11, %v1401_v23  ;;  %1409 = vperm.xlu0 %1953, %v1401_v23  }
 0x7a4   : > { %v1404_v46 = vmul.f32 1.442695, %v1403_v24 }
 0x81d   : > { %v1410_v25 = vpop.permute.xlu0 %1409 }
 0x81e   : > { %v1415_v26 = vrot.slane %v1410_v25, %v1334_v39 }
 0x820   : > { %v1416_v27 = vsub.f32 %v1352_v61, %v1415_v26  ;;  %v1417_v28 = vsub.f32 %v1353_v3, %v1415_v26  ;;  %v1418_v29 = vsub.f32 %v1354_v62, %v1415_v26  ;;  %v1419_v30 = vsub.f32 %v1355_v5, %v1415_v26 }
 0x822   : > { %v1420_v31 = vmul.f32 1.442695, %v1416_v27  ;;  %v1422_v32 = vmul.f32 1.442695, %v1417_v28  ;;  %v1424_v33 = vmul.f32 1.442695, %v1418_v29 }
 0x823   : > { %v1426_v34 = vmul.f32 1.442695, %v1419_v30 }
 0x824   : > { %1978 = vpow2.f32 %v1420_v31 }
 0x825   : > { %1980 = vpow2.f32 %v1422_v32 }
 0x826   : > { %1982 = vpow2.f32 %v1424_v33 }
 0x827   : > { %1984 = vpow2.f32 %v1426_v34 }
 0x828   : > { %1986 = vpow2.f32 %v1404_v46 }
 0x831   : > { %v1979_v35 = vpop.eup %1978 }
 0x832   : > { %v1981_v36 = vpop.eup %1980  ;;  %v1428_v37 = vsel %vm1391_vm9, %v1979_v35, 0.0 }
 0x833   : > { %v1983_v38 = vpop.eup %1982  ;;  %v1429_v40 = vsel %vm1391_vm9, %v1981_v36, 0.0 }
 0x834   : > { %v1985_v39 = vpop.eup %1984  ;;  %v1430_v41 = vadd.f32 %v1429_v40, %v1428_v37  ;;  %v1431_v42 = vsel %vm1391_vm9, %v1983_v38, 0.0 }
 0x835   : > { %v1433_v44 = vsel %vm1391_vm9, %v1985_v39, 0.0  ;;  %v1987_v47 = vpop.eup %1986 }
 0x836   : > { %v1432_v43 = vadd.f32 %v1431_v42, %v1430_v41  ;;  %v1406_v49 = vmul.f32 %v1987_v47, %v1402_v48 }
 0x838   : > { %v1434_v45 = vadd.f32 %v1433_v44, %v1432_v43 }
 0x83a   : > { %1435 = vadd.xlane.f32.xlu1 %v1434_v45 }
 0x8c2   : > { %1444 = sbr.rel (%p1738_p9) target bundleno = 2273 (0x8e1), region = 104 }
 0x8c3   : > { %v1436_v50 = vpop.xlane.xlu1 %1435 }
 0x8c4   : > { %v1437_v51 = vadd.f32 %v1436_v50, %v1406_v49 }
 0x8c6   : > { %1439 = vst.msk [vmem:[#allocation5] sm:$0x1] %vm1438_vm11, %v1437_v51 }
 0x8c7   : > { %v1445_v54 = vld [vmem:[#allocation4] sm:$0x1] }
 0x8cd   : > { %v1446_v52 = vld [vmem:[#allocation5] sm:$0x1] }
 0x8ce   : > { %1988 = vlog2.f32 %v1446_v52 }
 0x8db   : > { %v1989_v53 = vpop.eup %1988 }
 0x8dc   : > { %v1448_v55 = vmul.f32 0.6931472, %v1989_v53 }
 0x8de   : > { %v1449_v56 = vadd.f32 %v1448_v55, %v1445_v54 }
 0x8e0   : > { %1450 = vst.msk [vmem:[#allocation19] sm:$0x1] %vm1438_vm11, %v1449_v56 }
 0x8e1 PF: > { %s2355_s23 = smov [#allocation19]   ;;  %s1752_s28 = sshll.u32 %s2460_s22, 6 }
 0x8e2   : > { %s1477_s25 = sshll.u32 %s2355_s23, 4  ;;  %s2940_s17 = sld [smem:[#allocation44_spill]]  ;;  %s1478_s25 = int_to_ptr.vmem [resolvable:$true] %s1477_s25 }
 0x8e3   : > { %s2176_s18 = scalar_lea.vmem %s1478_s25, 16  ;;  %p2941_p13 = scmp.eq.s32.totalorder %s2460_s22, 2 }
 0x8e4   : > { %p2177_p12 = scmp.ne.s32.totalorder %s1478_s25, %s2176_s18  ;;  %s2182_s29 = scalar_lea.vmem %s1478_s25, 32 }
 0x8e5   : > { %p2183_p8 = scmp.lt.s32.totalorder %s1478_s25, %s1478_s25  ;;  %p2184_p0 = scmp.lt.s32.totalorder %s2182_s29, %s2176_s18 }
 0x8e6   : > { %p2178_p1 = pnand %p2177_p12, %p2941_p13 }
 0x8e7   : > { %p2185_p5 = por %p2184_p0, %p2183_p8 }
 0x8e8   : > { %s2786_s16 = scalar_lea.hbm %s2940_s17, %s1752_s28  ;;  %p2179_p11 = pneg %p2178_p1 }
 0x8ea   : > { %p2186_p10 = pnand %p2185_p5, %p2179_p11 }
 0x8ec   : > { %2189 = shalt.err (!%p2186_p10)
}
 0x8ed   : > { %p2942_p3 = pmov %p2941_p13  ;;  %s2943_s3 = sld [smem:[#allocation45_spill]] }
 0x8ee   : > { %s2944_s12 = sld [smem:[#allocation35_spill]]  ;;  %s1466_s13 = sshll.u32 %s2684_s15, 4  ;;  %s1467_s13 = int_to_ptr.vmem [resolvable:$true] %s1466_s13 }
 0x8ef   : > { %s2356_s7 = smov [#allocation21]   ;;  %s1452_s2 = scalar_lea.sflag [#allocation8], %s2665_s26 }
 0x8f0   : > { %s1488_s9 = sshll.u32 %s2356_s7, 4  ;;  %s2200_s27 = scalar_lea.vmem %s1467_s13, 64  ;;  %s1489_s9 = int_to_ptr.vmem [resolvable:$true] %s1488_s9 }
 0x8f1   : > { %p2201_p7 = scmp.ne.s32.totalorder %s1467_s13, %s2200_s27  ;;  %s2357_s20 = smov [#allocation18]  }
 0x8f2   : > { %s2204_s14 = sshll.u32 %s2357_s20, 4  ;;  %s2205_s14 = int_to_ptr.vmem [resolvable:$false] %s2204_s14 }
 0x8f3   : > { %1826 = dma.vmem_to_hbm [thread:$0]  (%p2942_p3), %s1478_s25, 16, %s2943_s3, [#allocation20]  }
 0x8f4   : > { %p2945_p2 = scmp.ne.s32.totalorder %s2944_s12, 0  ;;  %s2206_s5 = scalar_lea.vmem %s2205_s14, 128 }
 0x8f5   : > { %p2207_p9 = scmp.lt.s32.totalorder %s1467_s13, %s2205_s14  ;;  %p2208_p12 = scmp.lt.s32.totalorder %s2206_s5, %s2200_s27 }
 0x8f6   : > { %p2202_p4 = pnand %p2201_p7, %p2945_p2 }
 0x8f7   : > { %p2209_p13 = por %p2208_p12, %p2207_p9 }
 0x8f8   : > { %p2203_p6 = pneg %p2202_p4 }
 0x8fa   : > { %p2210_p1 = pnand %p2209_p13, %p2203_p6 }
 0x8fc   : > { %2213 = shalt.err (!%p2210_p1)
}
 0x8fd   : > { %s2214_s15 = scalar_lea.hbm %s2786_s16, 64  ;;  %s2218_s25 = scalar_lea.hbm %s2940_s17, 192 }
 0x8fe   : > { %p2215_p11 = scmp.ne.s32.totalorder %s2786_s16, %s2214_s15  ;;  %p2219_p5 = scmp.lt.s32.totalorder %s2786_s16, %s2940_s17 }
 0x8ff   : > { %p2220_p10 = scmp.lt.s32.totalorder %s2218_s25, %s2214_s15 }
 0x900   : > { %p2216_p8 = pnand %p2215_p11, %p2945_p2 }
 0x901   : > { %p2221_p3 = por %p2220_p10, %p2219_p5 }
 0x902   : > { %p2217_p0 = pneg %p2216_p8 }
 0x904   : > { %p2222_p7 = pnand %p2221_p3, %p2217_p0 }
 0x906   : > { %2225 = shalt.err (!%p2222_p7)
}
 0x907   : > { %1824 = dma.vmem_to_hbm [thread:$0]  (%p2945_p2), %s1467_s13, 64, %s2786_s16, %s1452_s2  }
 0x908   : > { %s2226_s24 = scalar_lea.vmem %s1489_s9, 16  ;;  %p2946_p6 = scmp.eq.s32.totalorder %s2460_s22, 2 }
 0x909   : > { %p2227_p4 = scmp.ne.s32.totalorder %s1489_s9, %s2226_s24  ;;  %s2232_s18 = scalar_lea.vmem %s1489_s9, 32 }
 0x90a   : > { %p2233_p13 = scmp.lt.s32.totalorder %s1489_s9, %s1489_s9  ;;  %p2234_p1 = scmp.lt.s32.totalorder %s2232_s18, %s2226_s24 }
 0x90b   : > { %p2228_p9 = pnand %p2227_p4, %p2946_p6 }
 0x90c   : > { %p2235_p11 = por %p2234_p1, %p2233_p13 }
 0x90d   : > { %p2229_p12 = pneg %p2228_p9 }
 0x90f   : > { %p2236_p8 = pnand %p2235_p11, %p2229_p12 }
 0x911   : > { %2239 = shalt.err (!%p2236_p8)
}
 0x912   : > { %p2947_p0 = pmov %p2946_p6  ;;  %s2948_s30 = sld [smem:[#allocation46_spill]] }
 0x913   : > { %s2358_s16 = smov [#allocation22]  }
 0x914   : > { %s1499_s3 = sshll.u32 %s2358_s16, 4  ;;  %p2949_p5 = pmov %p2947_p0  ;;  %s1500_s3 = int_to_ptr.vmem [resolvable:$true] %s1499_s3 }
 0x915   : > { %s2250_s12 = scalar_lea.vmem %s1500_s3, 16  ;;  %s2256_s13 = scalar_lea.vmem %s1500_s3, 32 }
 0x916   : > { %p2251_p2 = scmp.ne.s32.totalorder %s1500_s3, %s2250_s12  ;;  %p2257_p7 = scmp.lt.s32.totalorder %s1500_s3, %s1500_s3 }
 0x917   : > { %p2258_p4 = scmp.lt.s32.totalorder %s2256_s13, %s2250_s12 }
 0x918   : > { %1828 = dma.vmem_to_hbm [thread:$0]  (%p2947_p0), %s1489_s9, 16, %s2948_s30, [#allocation20]  }
 0x919   : > { %p2252_p10 = pnand %p2251_p2, %p2949_p5  ;;  %p2259_p6 = por %p2258_p4, %p2257_p7 }
 0x91b   : > { %p2253_p3 = pneg %p2252_p10 }
 0x91d   : > { %p2260_p9 = pnand %p2259_p6, %p2253_p3 }
 0x91f   : > { %2263 = shalt.err (!%p2260_p9)
}
 0x920   : > { %p2950_p12 = pmov %p2947_p0  ;;  %s2951_s27 = sld [smem:[#allocation47_spill]] }
 0x921   : > { %p2952_p13 = pmov %p2947_p0 }
 0x926   : > { %1830 = dma.vmem_to_hbm [thread:$0]  (%p2950_p12), %s1500_s3, 16, %s2951_s27, [#allocation23]  }
 0x927   : > { %2307 = dma.done.wait (%p2952_p13), [#allocation20], 32   ;;  %p2953_p1 = pmov %p2947_p0 }
 0x928   : > { %p2954_p11 = pmov %p2947_p0 }
 0x929   : > { %2309 = vsyncadd (%p2953_p1), [#allocation20], 4294967264 }
 0x92a   : > { %2311 = dma.done.wait (%p2954_p11), [#allocation23], 16   ;;  %p2955_p8 = pmov %p2947_p0 }
 0x92c   : > { %2313 = vsyncadd (%p2955_p8), [#allocation23], 4294967280 }
 0x92d PF: > { %s2956_s9 = sld [smem:[#allocation31_spill]]  ;;  %p1882_p0 = scmp.ge.s32.totalorder %s2332_s21, 2 }
 0x92e   : > { %s2957_s20 = sld [smem:[#allocation33_spill]] }
 0x933   : > { %s1523_s14 = sand.u32 1, %s2956_s9  }
 0x934   : > { %p2958_p2 = scmp.ne.s32.totalorder %s2957_s20, 0  ;;  %s1524_s5 = scalar_lea.sflag [#allocation8], %s1523_s14 }
 0x936   : > { %p1862_p5 = pnand %p1882_p0, %p2958_p2 }
 0x938   : > { %p1863_p10 = pneg %p1862_p5 }
 0x93a   : > { %2315 = dma.done.wait (%p1863_p10), %s1524_s5, 64  }
 0x93b   : > { %2317 = vsyncadd (%p1863_p10), %s1524_s5, 4294967232  ;;  %s2959_s21 = sld [smem:[#allocation34_spill]]  ;;  %s2962_s18 = smov %s2324_s19 }
 0x93c   : > { %s2960_s15 = sld [smem:[#allocation32_spill]] }
 0x93d   : > { %s2961_s20 = sld [smem:[#allocation36_spill]] }
 0x941   : > { %p34_p3 = scmp.ge.s32.totalorder %s2959_s21, 5  }
 0x942   : > { %s2963_s19 = smov %s2960_s15 }
 0x943   :  { %36 = sbr.rel (!%p34_p3) target bundleno = 22 (0x16), region = 180 }
 0x948   :  { %1529 = vsyncpa [#allocation7], 1 }
 0x949   :  { %1531 = vsyncpa [#allocation7 + $0x1], 1 }
 0x94a   :  { %1532 = vsyncpa [#allocation10], 1 }
 0x94b   :  { %1533 = vsyncpa [#allocation13], 1 }
 0x94c   :  { %1534 = vsyncpa [#allocation16], 1 }
 0x94d   :  { %1536 = vsyncpa [#allocation16 + $0x1], 1 }
 0x94e   :  { %1537 = vsyncpa [#allocation8], 1 }
 0x94f   :  { %1539 = vsyncpa [#allocation8 + $0x1], 1 }
 0x950   :  { %1540 = vsyncpa [#allocation20], 1 }
 0x951   :  { %1541 = vsyncpa [#allocation23], 1 }

</bundles_post_ra>
